<compile_context>
chip_gen: v7x
topology: tpu7x:2x2x1
jax: 0.10.0
libtpu: 0.0.40
codegen_flags: <defaults>
</compile_context>

<pallas_src>
import functools

import jax
import jax.numpy as jnp
from jax.experimental import pallas as pl
from jax.experimental.pallas import tpu as pltpu

INPUT_DIM = 150
IN_PAD = 256            # input feature dim zero-padded to a lane-dense multiple of 128
OUT_PAD = 256           # last-layer output padded likewise (sliced back to 150 in-kernel)
N_LAYERS = 14           # 7 encoder Linear layers + 7 decoder Linear layers
N_MID = N_LAYERS - 2    # 12 interior layers, all widths <= MID


def _leaky_relu(x):
    # nn.LeakyReLU default negative_slope = 0.01; max(x, 0.01x) == where(x > 0, x, 0.01x)
    return jnp.maximum(x, 0.01 * x)


def _round_up(n, m):
    return ((n + m - 1) // m) * m


def _cdiv(a, b):
    return -(-a // b)


def _mrae_kernel(activation, x_ref, wf_ref, wm_ref, wl_ref,
                 bf_ref, bm_ref, bl_ref, out_ref):
    """One batch tile of the fused 14-layer MLP autoencoder.

    x_ref  : (TILE_B, IN_PAD)        bf16  zero-padded input tile
    wf_ref : (IN_PAD, MID)           bf16  layer-0 weight (VMEM-resident)
    wm_ref : (N_MID, MID, MID)       bf16  interior-layer weight cube (VMEM-resident)
    wl_ref : (MID, OUT_PAD)          bf16  layer-13 weight (VMEM-resident)
    bf_ref : (1, MID)                f32   biases (padded with zeros)
    bm_ref : (N_MID, 1, MID)         f32
    bl_ref : (1, OUT_PAD)            f32
    out_ref: (TILE_B, INPUT_DIM)     f32   (full-dim 150-lane output block)
    """
    act = _leaky_relu if activation == "leaky_relu" else jnp.tanh

    # Layer 0: (tile_b, IN_PAD) bf16 @ (IN_PAD, MID) bf16 -> f32 MXU accumulate
    acc = jnp.dot(x_ref[...], wf_ref[...], preferred_element_type=jnp.float32)
    h = act(acc + bf_ref[...]).astype(jnp.bfloat16)     # bf16 inter-layer activations
    # zero-padded lanes stay exactly zero: padded W cols / bias are 0 and act(0) = 0

    # 12 interior layers, static unroll of lane-dense MID x MID matmuls
    for i in range(N_MID):
        acc = jnp.dot(h, wm_ref[i], preferred_element_type=jnp.float32)
        h = act(acc + bm_ref[i]).astype(jnp.bfloat16)

    # Last layer: (tile_b, MID) @ (MID, OUT_PAD) -> keep only the real 150 columns
    acc = jnp.dot(h, wl_ref[...], preferred_element_type=jnp.float32)
    y = act(acc + bl_ref[...])
    out_ref[...] = y[:, :INPUT_DIM].astype(out_ref.dtype)


def init_params(key, latent_dim, layer_size):
    """Deterministic params matching nn.Linear shapes (PyTorch-style uniform init).

    Stored as (in_features, out_features) so each layer is h @ W + b (equivalent to
    PyTorch's x @ W.T + b with W stored transposed)."""
    dims = (
        [INPUT_DIM] + [layer_size] * 6 + [latent_dim]      # encoder
        + [layer_size] * 6 + [INPUT_DIM]                   # decoder
    )
    params = []
    for i in range(len(dims) - 1):
        fan_in, fan_out = dims[i], dims[i + 1]
        key, k_w, k_b = jax.random.split(key, 3)
        bound = 1.0 / float(fan_in) ** 0.5
        w = jax.random.uniform(k_w, (fan_in, fan_out), jnp.float32, -bound, bound)
        b = jax.random.uniform(k_b, (fan_out,), jnp.float32, -bound, bound)
        params += [w, b]
    return params


def _pack_params(params, mid):
    """Pack the 14 layers into: first weight (IN_PAD x MID), interior cube
    (N_MID x MID x MID), last weight (MID x OUT_PAD), plus matching f32 biases.
    Everything zero-padded so every matmul is lane-dense and aligned."""
    n = len(params) // 2
    assert n == N_LAYERS, f"expected {N_LAYERS} Linear layers, got {n}"

    w0, b0 = params[0], params[1]
    wn, bn = params[-2], params[-1]
    assert w0.shape[0] == INPUT_DIM and w0.shape[0] <= IN_PAD, w0.shape
    assert w0.shape[1] <= mid, (w0.shape, mid)
    assert wn.shape[0] <= mid and wn.shape[1] == INPUT_DIM <= OUT_PAD, wn.shape

    wf = jnp.zeros((IN_PAD, mid), jnp.bfloat16)
    bf = jnp.zeros((1, mid), jnp.float32)
    wm = jnp.zeros((N_MID, mid, mid), jnp.bfloat16)
    bm = jnp.zeros((N_MID, 1, mid), jnp.float32)
    wl = jnp.zeros((mid, OUT_PAD), jnp.bfloat16)
    bl = jnp.zeros((1, OUT_PAD), jnp.float32)

    wf = wf.at[:w0.shape[0], :w0.shape[1]].set(w0.astype(jnp.bfloat16))
    bf = bf.at[0, :b0.shape[0]].set(b0.astype(jnp.float32))

    for i in range(1, N_LAYERS - 1):
        w, b = params[2 * i], params[2 * i + 1]
        assert w.shape[0] <= mid and w.shape[1] <= mid, (i, w.shape, mid)
        wm = wm.at[i - 1, :w.shape[0], :w.shape[1]].set(w.astype(jnp.bfloat16))
        bm = bm.at[i - 1, 0, :b.shape[0]].set(b.astype(jnp.float32))

    wl = wl.at[:wn.shape[0], :wn.shape[1]].set(wn.astype(jnp.bfloat16))
    bl = bl.at[0, :bn.shape[0]].set(bn.astype(jnp.float32))
    return wf, wm, wl, bf, bm, bl


def mixing_ratio_ae_forward(x, params, activation="leaky_relu", max_tile_b=512):
    """Pallas wrapper: batch-tiled 1-D grid; packed, padded parameters stay VMEM-resident."""
    if activation not in ("leaky_relu", "tanh"):
        raise ValueError("Activation function not supported")
    batch, feat = x.shape
    assert feat == INPUT_DIM, f"expected {INPUT_DIM} input features, got {feat}"

    # All interior widths (layer_size / latent_dim) share one lane-dense padded width.
    hidden_out_dims = [params[2 * i].shape[1] for i in range(N_LAYERS - 1)]
    mid = max(128, _round_up(max(hidden_out_dims), 128))

    wf, wm, wl, bf, bm, bl = _pack_params(params, mid)

    # Batch tiling: at least 2 tiles (keeps both v7x TensorCores busy), tile_b a multiple
    # of 8 sublanes, b_pad hugging the real batch (minimal garbage-row work).
    n_tiles = max(2, _cdiv(batch, max_tile_b))
    tile_b = _round_up(_cdiv(batch, n_tiles), 8)
    b_pad = tile_b * n_tiles

    # Single cheap wrapper op: cast to bf16 + zero-pad rows/lanes (half the bytes of an
    # f32 pad).  Padded rows compute act(bias) garbage that is sliced off below.
    x_pad = jnp.zeros((b_pad, IN_PAD), jnp.bfloat16).at[:batch, :INPUT_DIM].set(
        x.astype(jnp.bfloat16))

    kernel = functools.partial(_mrae_kernel, activation)

    flops = 2 * b_pad * (IN_PAD * mid + N_MID * mid * mid + mid * OUT_PAD)
    transcendentals = (b_pad * (mid * (N_LAYERS - 1) + OUT_PAD)
                       if activation == "tanh" else 0)
    bytes_accessed = (x_pad.size * 2 + b_pad * INPUT_DIM * 4          # input + output
                      + (wf.size + wm.size + wl.size) * 2             # bf16 weights (once)
                      + (bf.size + bm.size + bl.size) * 4)            # f32 biases (once)

    out_pad = pl.pallas_call(
        kernel,
        out_shape=jax.ShapeDtypeStruct((b_pad, INPUT_DIM), jnp.float32),
        grid_spec=pltpu.PrefetchScalarGridSpec(
            num_scalar_prefetch=0,
            grid=(b_pad // tile_b,),
            in_specs=[
                pl.BlockSpec((tile_b, IN_PAD), lambda i: (i, 0)),
                # constant index_maps: parameters DMA'd once, reused across all grid steps
                pl.BlockSpec((IN_PAD, mid), lambda i: (0, 0)),
                pl.BlockSpec((N_MID, mid, mid), lambda i: (0, 0, 0)),
                pl.BlockSpec((mid, OUT_PAD), lambda i: (0, 0)),
                pl.BlockSpec((1, mid), lambda i: (0, 0)),
                pl.BlockSpec((N_MID, 1, mid), lambda i: (0, 0, 0)),
                pl.BlockSpec((1, OUT_PAD), lambda i: (0, 0)),
            ],
            out_specs=pl.BlockSpec((tile_b, INPUT_DIM), lambda i: (i, 0)),
        ),
        compiler_params=pltpu.CompilerParams(
            dimension_semantics=("parallel",),          # shards batch tiles across TCs (v7x)
            vmem_limit_bytes=32 * 1024 * 1024,          # actual footprint ~2-3 MiB
        ),
        cost_estimate=pl.CostEstimate(
            flops=flops,
            transcendentals=transcendentals,
            bytes_accessed=bytes_accessed,
        ),
    )(x_pad, wf, wm, wl, bf, bm, bl)

    return out_pad[:batch].astype(x.dtype)


def _reference_forward_f32(x, params, activation="leaky_relu"):
    act = _leaky_relu if activation == "leaky_relu" else jnp.tanh
    h = x.astype(jnp.float32)
    for i in range(len(params) // 2):
        h = act(h @ params[2 * i] + params[2 * i + 1])
    return h


def _reference_forward_bf16(x, params, activation="leaky_relu"):
    """Mirrors the kernel math exactly: bf16 matmul operands, f32 accumulate/bias/activation."""
    act = _leaky_relu if activation == "leaky_relu" else jnp.tanh
    h = x.astype(jnp.float32)
    for i in range(len(params) // 2):
        w = params[2 * i].astype(jnp.bfloat16)
        acc = jnp.dot(h.astype(jnp.bfloat16), w, preferred_element_type=jnp.float32)
        h = act(acc + params[2 * i + 1])
    return h


if __name__ == "__main__":
    latent_dim = 8
    layer_size = 32
    batch = 12   # small; not a multiple of the batch tile -> exercises row padding + grid=(2,)

    key = jax.random.PRNGKey(0)
    key, k_x = jax.random.split(key)
    x = jax.random.normal(k_x, (batch, INPUT_DIM), dtype=jnp.float32)
    params = init_params(key, latent_dim, layer_size)

    for act_name in ("leaky_relu", "tanh"):
        out = mixing_ratio_ae_forward(x, params, activation=act_name)
        out = jax.block_until_ready(out)
        assert out.shape == (batch, INPUT_DIM)

        # Tight check vs a reference using the same bf16-operand / f32-accumulate math.
        ref_bf16 = _reference_forward_bf16(x, params, activation=act_name)
        assert jnp.allclose(out, ref_bf16, rtol=1e-3, atol=1e-3), (
            f"{act_name}: mismatch vs bf16-operand reference")

        # Loose check vs the full-f32 reference (bf16 operands drift slightly over 14 layers).
        ref_f32 = _reference_forward_f32(x, params, activation=act_name)
        assert jnp.allclose(out, ref_f32, rtol=5e-2, atol=5e-2), (
            f"{act_name}: mismatch vs f32 reference")

    print("KERNEL_OK")
</pallas_src>

<mosaic_0001>
module attributes {stable_mosaic.version = 11 : i64} {
  func.func @_mrae_kernel(%arg0: i32, %arg1: memref<8x256xbf16, #tpu.memory_space<vmem>>, %arg2: memref<256x128xbf16, #tpu.memory_space<vmem>>, %arg3: memref<12x128x128xbf16, #tpu.memory_space<vmem>>, %arg4: memref<128x256xbf16, #tpu.memory_space<vmem>>, %arg5: memref<1x128xf32, #tpu.memory_space<vmem>>, %arg6: memref<12x1x128xf32, #tpu.memory_space<vmem>>, %arg7: memref<1x256xf32, #tpu.memory_space<vmem>>, %arg8: memref<8x150xf32, #tpu.memory_space<vmem>>) attributes {dimension_semantics = [#tpu.dimension_semantics<parallel>], iteration_bounds = array<i64: 2>, scalar_prefetch = 0 : i64, scratch_operands = 0 : i64, tpu.core_type = #tpu.core_type<tc>, window_params = [{transform_indices = @transform_0, window_bounds = array<i64: 8, 256>}, {pipeline_mode = #tpu.pipeline_mode<synchronous>, transform_indices = @transform_1, window_bounds = array<i64: 256, 128>}, {pipeline_mode = #tpu.pipeline_mode<synchronous>, transform_indices = @transform_2, window_bounds = array<i64: 12, 128, 128>}, {pipeline_mode = #tpu.pipeline_mode<synchronous>, transform_indices = @transform_3, window_bounds = array<i64: 128, 256>}, {pipeline_mode = #tpu.pipeline_mode<synchronous>, transform_indices = @transform_4, window_bounds = array<i64: 1, 128>}, {pipeline_mode = #tpu.pipeline_mode<synchronous>, transform_indices = @transform_5, window_bounds = array<i64: 12, 1, 128>}, {pipeline_mode = #tpu.pipeline_mode<synchronous>, transform_indices = @transform_6, window_bounds = array<i64: 1, 256>}, {transform_indices = @transform_7, window_bounds = array<i64: 8, 150>}]} {
    %c0 = arith.constant 0 : index
    %c0_0 = arith.constant 0 : index
    %0 = vector.load %arg1[%c0, %c0_0] : memref<8x256xbf16, #tpu.memory_space<vmem>>, vector<8x256xbf16>
    %c0_1 = arith.constant 0 : index
    %c0_2 = arith.constant 0 : index
    %1 = vector.load %arg2[%c0_1, %c0_2] : memref<256x128xbf16, #tpu.memory_space<vmem>>, vector<256x128xbf16>
    %cst = arith.constant dense<0.000000e+00> : vector<8x128xf32>
    %2 = tpu.matmul %0, %1, %cst {dimension_numbers = #tpu.dot_dimension_numbers<[1], [0], [0], [1], [0, 0, 1, 1], [], []>} : vector<8x256xbf16>, vector<256x128xbf16>, vector<8x128xf32> -> vector<8x128xf32>
    %c0_3 = arith.constant 0 : index
    %c0_4 = arith.constant 0 : index
    %3 = vector.load %arg5[%c0_3, %c0_4] : memref<1x128xf32, #tpu.memory_space<vmem>>, vector<1x128xf32>
    %4 = vector.broadcast %3 : vector<1x128xf32> to vector<8x128xf32>
    %5 = arith.addf %2, %4 : vector<8x128xf32>
    %cst_5 = arith.constant 0.00999999977 : f32
    %6 = vector.broadcast %cst_5 : f32 to vector<8x128xf32>
    %7 = arith.mulf %6, %5 : vector<8x128xf32>
    %8 = arith.maximumf %5, %7 : vector<8x128xf32>
    %9 = arith.truncf %8 : vector<8x128xf32> to vector<8x128xbf16>
    %c0_6 = arith.constant 0 : index
    %c0_7 = arith.constant 0 : index
    %c0_8 = arith.constant 0 : index
    %10 = vector.load %arg3[%c0_6, %c0_7, %c0_8] : memref<12x128x128xbf16, #tpu.memory_space<vmem>>, vector<1x128x128xbf16>
    %11 = vector.shape_cast %10 : vector<1x128x128xbf16> to vector<128x128xbf16>
    %cst_9 = arith.constant dense<0.000000e+00> : vector<8x128xf32>
    %12 = tpu.matmul %9, %11, %cst_9 {dimension_numbers = #tpu.dot_dimension_numbers<[1], [0], [0], [1], [0, 0, 1, 1], [], []>} : vector<8x128xbf16>, vector<128x128xbf16>, vector<8x128xf32> -> vector<8x128xf32>
    %c0_10 = arith.constant 0 : index
    %c0_11 = arith.constant 0 : index
    %c0_12 = arith.constant 0 : index
    %13 = vector.load %arg6[%c0_10, %c0_11, %c0_12] : memref<12x1x128xf32, #tpu.memory_space<vmem>>, vector<1x1x128xf32>
    %14 = vector.shape_cast %13 : vector<1x1x128xf32> to vector<1x128xf32>
    %15 = vector.broadcast %14 : vector<1x128xf32> to vector<8x128xf32>
    %16 = arith.addf %12, %15 : vector<8x128xf32>
    %cst_13 = arith.constant 0.00999999977 : f32
    %17 = vector.broadcast %cst_13 : f32 to vector<8x128xf32>
    %18 = arith.mulf %17, %16 : vector<8x128xf32>
    %19 = arith.maximumf %16, %18 : vector<8x128xf32>
    %20 = arith.truncf %19 : vector<8x128xf32> to vector<8x128xbf16>
    %c1 = arith.constant 1 : index
    %c0_14 = arith.constant 0 : index
    %c0_15 = arith.constant 0 : index
    %21 = vector.load %arg3[%c1, %c0_14, %c0_15] : memref<12x128x128xbf16, #tpu.memory_space<vmem>>, vector<1x128x128xbf16>
    %22 = vector.shape_cast %21 : vector<1x128x128xbf16> to vector<128x128xbf16>
    %cst_16 = arith.constant dense<0.000000e+00> : vector<8x128xf32>
    %23 = tpu.matmul %20, %22, %cst_16 {dimension_numbers = #tpu.dot_dimension_numbers<[1], [0], [0], [1], [0, 0, 1, 1], [], []>} : vector<8x128xbf16>, vector<128x128xbf16>, vector<8x128xf32> -> vector<8x128xf32>
    %c1_17 = arith.constant 1 : index
    %c0_18 = arith.constant 0 : index
    %c0_19 = arith.constant 0 : index
    %24 = vector.load %arg6[%c1_17, %c0_18, %c0_19] : memref<12x1x128xf32, #tpu.memory_space<vmem>>, vector<1x1x128xf32>
    %25 = vector.shape_cast %24 : vector<1x1x128xf32> to vector<1x128xf32>
    %26 = vector.broadcast %25 : vector<1x128xf32> to vector<8x128xf32>
    %27 = arith.addf %23, %26 : vector<8x128xf32>
    %cst_20 = arith.constant 0.00999999977 : f32
    %28 = vector.broadcast %cst_20 : f32 to vector<8x128xf32>
    %29 = arith.mulf %28, %27 : vector<8x128xf32>
    %30 = arith.maximumf %27, %29 : vector<8x128xf32>
    %31 = arith.truncf %30 : vector<8x128xf32> to vector<8x128xbf16>
    %c2 = arith.constant 2 : index
    %c0_21 = arith.constant 0 : index
    %c0_22 = arith.constant 0 : index
    %32 = vector.load %arg3[%c2, %c0_21, %c0_22] : memref<12x128x128xbf16, #tpu.memory_space<vmem>>, vector<1x128x128xbf16>
    %33 = vector.shape_cast %32 : vector<1x128x128xbf16> to vector<128x128xbf16>
    %cst_23 = arith.constant dense<0.000000e+00> : vector<8x128xf32>
    %34 = tpu.matmul %31, %33, %cst_23 {dimension_numbers = #tpu.dot_dimension_numbers<[1], [0], [0], [1], [0, 0, 1, 1], [], []>} : vector<8x128xbf16>, vector<128x128xbf16>, vector<8x128xf32> -> vector<8x128xf32>
    %c2_24 = arith.constant 2 : index
    %c0_25 = arith.constant 0 : index
    %c0_26 = arith.constant 0 : index
    %35 = vector.load %arg6[%c2_24, %c0_25, %c0_26] : memref<12x1x128xf32, #tpu.memory_space<vmem>>, vector<1x1x128xf32>
    %36 = vector.shape_cast %35 : vector<1x1x128xf32> to vector<1x128xf32>
    %37 = vector.broadcast %36 : vector<1x128xf32> to vector<8x128xf32>
    %38 = arith.addf %34, %37 : vector<8x128xf32>
    %cst_27 = arith.constant 0.00999999977 : f32
    %39 = vector.broadcast %cst_27 : f32 to vector<8x128xf32>
    %40 = arith.mulf %39, %38 : vector<8x128xf32>
    %41 = arith.maximumf %38, %40 : vector<8x128xf32>
    %42 = arith.truncf %41 : vector<8x128xf32> to vector<8x128xbf16>
    %c3 = arith.constant 3 : index
    %c0_28 = arith.constant 0 : index
    %c0_29 = arith.constant 0 : index
    %43 = vector.load %arg3[%c3, %c0_28, %c0_29] : memref<12x128x128xbf16, #tpu.memory_space<vmem>>, vector<1x128x128xbf16>
    %44 = vector.shape_cast %43 : vector<1x128x128xbf16> to vector<128x128xbf16>
    %cst_30 = arith.constant dense<0.000000e+00> : vector<8x128xf32>
    %45 = tpu.matmul %42, %44, %cst_30 {dimension_numbers = #tpu.dot_dimension_numbers<[1], [0], [0], [1], [0, 0, 1, 1], [], []>} : vector<8x128xbf16>, vector<128x128xbf16>, vector<8x128xf32> -> vector<8x128xf32>
    %c3_31 = arith.constant 3 : index
    %c0_32 = arith.constant 0 : index
    %c0_33 = arith.constant 0 : index
    %46 = vector.load %arg6[%c3_31, %c0_32, %c0_33] : memref<12x1x128xf32, #tpu.memory_space<vmem>>, vector<1x1x128xf32>
    %47 = vector.shape_cast %46 : vector<1x1x128xf32> to vector<1x128xf32>
    %48 = vector.broadcast %47 : vector<1x128xf32> to vector<8x128xf32>
    %49 = arith.addf %45, %48 : vector<8x128xf32>
    %cst_34 = arith.constant 0.00999999977 : f32
    %50 = vector.broadcast %cst_34 : f32 to vector<8x128xf32>
    %51 = arith.mulf %50, %49 : vector<8x128xf32>
    %52 = arith.maximumf %49, %51 : vector<8x128xf32>
    %53 = arith.truncf %52 : vector<8x128xf32> to vector<8x128xbf16>
    %c4 = arith.constant 4 : index
    %c0_35 = arith.constant 0 : index
    %c0_36 = arith.constant 0 : index
    %54 = vector.load %arg3[%c4, %c0_35, %c0_36] : memref<12x128x128xbf16, #tpu.memory_space<vmem>>, vector<1x128x128xbf16>
    %55 = vector.shape_cast %54 : vector<1x128x128xbf16> to vector<128x128xbf16>
    %cst_37 = arith.constant dense<0.000000e+00> : vector<8x128xf32>
    %56 = tpu.matmul %53, %55, %cst_37 {dimension_numbers = #tpu.dot_dimension_numbers<[1], [0], [0], [1], [0, 0, 1, 1], [], []>} : vector<8x128xbf16>, vector<128x128xbf16>, vector<8x128xf32> -> vector<8x128xf32>
    %c4_38 = arith.constant 4 : index
    %c0_39 = arith.constant 0 : index
    %c0_40 = arith.constant 0 : index
    %57 = vector.load %arg6[%c4_38, %c0_39, %c0_40] : memref<12x1x128xf32, #tpu.memory_space<vmem>>, vector<1x1x128xf32>
    %58 = vector.shape_cast %57 : vector<1x1x128xf32> to vector<1x128xf32>
    %59 = vector.broadcast %58 : vector<1x128xf32> to vector<8x128xf32>
    %60 = arith.addf %56, %59 : vector<8x128xf32>
    %cst_41 = arith.constant 0.00999999977 : f32
    %61 = vector.broadcast %cst_41 : f32 to vector<8x128xf32>
    %62 = arith.mulf %61, %60 : vector<8x128xf32>
    %63 = arith.maximumf %60, %62 : vector<8x128xf32>
    %64 = arith.truncf %63 : vector<8x128xf32> to vector<8x128xbf16>
    %c5 = arith.constant 5 : index
    %c0_42 = arith.constant 0 : index
    %c0_43 = arith.constant 0 : index
    %65 = vector.load %arg3[%c5, %c0_42, %c0_43] : memref<12x128x128xbf16, #tpu.memory_space<vmem>>, vector<1x128x128xbf16>
    %66 = vector.shape_cast %65 : vector<1x128x128xbf16> to vector<128x128xbf16>
    %cst_44 = arith.constant dense<0.000000e+00> : vector<8x128xf32>
    %67 = tpu.matmul %64, %66, %cst_44 {dimension_numbers = #tpu.dot_dimension_numbers<[1], [0], [0], [1], [0, 0, 1, 1], [], []>} : vector<8x128xbf16>, vector<128x128xbf16>, vector<8x128xf32> -> vector<8x128xf32>
    %c5_45 = arith.constant 5 : index
    %c0_46 = arith.constant 0 : index
    %c0_47 = arith.constant 0 : index
    %68 = vector.load %arg6[%c5_45, %c0_46, %c0_47] : memref<12x1x128xf32, #tpu.memory_space<vmem>>, vector<1x1x128xf32>
    %69 = vector.shape_cast %68 : vector<1x1x128xf32> to vector<1x128xf32>
    %70 = vector.broadcast %69 : vector<1x128xf32> to vector<8x128xf32>
    %71 = arith.addf %67, %70 : vector<8x128xf32>
    %cst_48 = arith.constant 0.00999999977 : f32
    %72 = vector.broadcast %cst_48 : f32 to vector<8x128xf32>
    %73 = arith.mulf %72, %71 : vector<8x128xf32>
    %74 = arith.maximumf %71, %73 : vector<8x128xf32>
    %75 = arith.truncf %74 : vector<8x128xf32> to vector<8x128xbf16>
    %c6 = arith.constant 6 : index
    %c0_49 = arith.constant 0 : index
    %c0_50 = arith.constant 0 : index
    %76 = vector.load %arg3[%c6, %c0_49, %c0_50] : memref<12x128x128xbf16, #tpu.memory_space<vmem>>, vector<1x128x128xbf16>
    %77 = vector.shape_cast %76 : vector<1x128x128xbf16> to vector<128x128xbf16>
    %cst_51 = arith.constant dense<0.000000e+00> : vector<8x128xf32>
    %78 = tpu.matmul %75, %77, %cst_51 {dimension_numbers = #tpu.dot_dimension_numbers<[1], [0], [0], [1], [0, 0, 1, 1], [], []>} : vector<8x128xbf16>, vector<128x128xbf16>, vector<8x128xf32> -> vector<8x128xf32>
    %c6_52 = arith.constant 6 : index
    %c0_53 = arith.constant 0 : index
    %c0_54 = arith.constant 0 : index
    %79 = vector.load %arg6[%c6_52, %c0_53, %c0_54] : memref<12x1x128xf32, #tpu.memory_space<vmem>>, vector<1x1x128xf32>
    %80 = vector.shape_cast %79 : vector<1x1x128xf32> to vector<1x128xf32>
    %81 = vector.broadcast %80 : vector<1x128xf32> to vector<8x128xf32>
    %82 = arith.addf %78, %81 : vector<8x128xf32>
    %cst_55 = arith.constant 0.00999999977 : f32
    %83 = vector.broadcast %cst_55 : f32 to vector<8x128xf32>
    %84 = arith.mulf %83, %82 : vector<8x128xf32>
    %85 = arith.maximumf %82, %84 : vector<8x128xf32>
    %86 = arith.truncf %85 : vector<8x128xf32> to vector<8x128xbf16>
    %c7 = arith.constant 7 : index
    %c0_56 = arith.constant 0 : index
    %c0_57 = arith.constant 0 : index
    %87 = vector.load %arg3[%c7, %c0_56, %c0_57] : memref<12x128x128xbf16, #tpu.memory_space<vmem>>, vector<1x128x128xbf16>
    %88 = vector.shape_cast %87 : vector<1x128x128xbf16> to vector<128x128xbf16>
    %cst_58 = arith.constant dense<0.000000e+00> : vector<8x128xf32>
    %89 = tpu.matmul %86, %88, %cst_58 {dimension_numbers = #tpu.dot_dimension_numbers<[1], [0], [0], [1], [0, 0, 1, 1], [], []>} : vector<8x128xbf16>, vector<128x128xbf16>, vector<8x128xf32> -> vector<8x128xf32>
    %c7_59 = arith.constant 7 : index
    %c0_60 = arith.constant 0 : index
    %c0_61 = arith.constant 0 : index
    %90 = vector.load %arg6[%c7_59, %c0_60, %c0_61] : memref<12x1x128xf32, #tpu.memory_space<vmem>>, vector<1x1x128xf32>
    %91 = vector.shape_cast %90 : vector<1x1x128xf32> to vector<1x128xf32>
    %92 = vector.broadcast %91 : vector<1x128xf32> to vector<8x128xf32>
    %93 = arith.addf %89, %92 : vector<8x128xf32>
    %cst_62 = arith.constant 0.00999999977 : f32
    %94 = vector.broadcast %cst_62 : f32 to vector<8x128xf32>
    %95 = arith.mulf %94, %93 : vector<8x128xf32>
    %96 = arith.maximumf %93, %95 : vector<8x128xf32>
    %97 = arith.truncf %96 : vector<8x128xf32> to vector<8x128xbf16>
    %c8 = arith.constant 8 : index
    %c0_63 = arith.constant 0 : index
    %c0_64 = arith.constant 0 : index
    %98 = vector.load %arg3[%c8, %c0_63, %c0_64] : memref<12x128x128xbf16, #tpu.memory_space<vmem>>, vector<1x128x128xbf16>
    %99 = vector.shape_cast %98 : vector<1x128x128xbf16> to vector<128x128xbf16>
    %cst_65 = arith.constant dense<0.000000e+00> : vector<8x128xf32>
    %100 = tpu.matmul %97, %99, %cst_65 {dimension_numbers = #tpu.dot_dimension_numbers<[1], [0], [0], [1], [0, 0, 1, 1], [], []>} : vector<8x128xbf16>, vector<128x128xbf16>, vector<8x128xf32> -> vector<8x128xf32>
    %c8_66 = arith.constant 8 : index
    %c0_67 = arith.constant 0 : index
    %c0_68 = arith.constant 0 : index
    %101 = vector.load %arg6[%c8_66, %c0_67, %c0_68] : memref<12x1x128xf32, #tpu.memory_space<vmem>>, vector<1x1x128xf32>
    %102 = vector.shape_cast %101 : vector<1x1x128xf32> to vector<1x128xf32>
    %103 = vector.broadcast %102 : vector<1x128xf32> to vector<8x128xf32>
    %104 = arith.addf %100, %103 : vector<8x128xf32>
    %cst_69 = arith.constant 0.00999999977 : f32
    %105 = vector.broadcast %cst_69 : f32 to vector<8x128xf32>
    %106 = arith.mulf %105, %104 : vector<8x128xf32>
    %107 = arith.maximumf %104, %106 : vector<8x128xf32>
    %108 = arith.truncf %107 : vector<8x128xf32> to vector<8x128xbf16>
    %c9 = arith.constant 9 : index
    %c0_70 = arith.constant 0 : index
    %c0_71 = arith.constant 0 : index
    %109 = vector.load %arg3[%c9, %c0_70, %c0_71] : memref<12x128x128xbf16, #tpu.memory_space<vmem>>, vector<1x128x128xbf16>
    %110 = vector.shape_cast %109 : vector<1x128x128xbf16> to vector<128x128xbf16>
    %cst_72 = arith.constant dense<0.000000e+00> : vector<8x128xf32>
    %111 = tpu.matmul %108, %110, %cst_72 {dimension_numbers = #tpu.dot_dimension_numbers<[1], [0], [0], [1], [0, 0, 1, 1], [], []>} : vector<8x128xbf16>, vector<128x128xbf16>, vector<8x128xf32> -> vector<8x128xf32>
    %c9_73 = arith.constant 9 : index
    %c0_74 = arith.constant 0 : index
    %c0_75 = arith.constant 0 : index
    %112 = vector.load %arg6[%c9_73, %c0_74, %c0_75] : memref<12x1x128xf32, #tpu.memory_space<vmem>>, vector<1x1x128xf32>
    %113 = vector.shape_cast %112 : vector<1x1x128xf32> to vector<1x128xf32>
    %114 = vector.broadcast %113 : vector<1x128xf32> to vector<8x128xf32>
    %115 = arith.addf %111, %114 : vector<8x128xf32>
    %cst_76 = arith.constant 0.00999999977 : f32
    %116 = vector.broadcast %cst_76 : f32 to vector<8x128xf32>
    %117 = arith.mulf %116, %115 : vector<8x128xf32>
    %118 = arith.maximumf %115, %117 : vector<8x128xf32>
    %119 = arith.truncf %118 : vector<8x128xf32> to vector<8x128xbf16>
    %c10 = arith.constant 10 : index
    %c0_77 = arith.constant 0 : index
    %c0_78 = arith.constant 0 : index
    %120 = vector.load %arg3[%c10, %c0_77, %c0_78] : memref<12x128x128xbf16, #tpu.memory_space<vmem>>, vector<1x128x128xbf16>
    %121 = vector.shape_cast %120 : vector<1x128x128xbf16> to vector<128x128xbf16>
    %cst_79 = arith.constant dense<0.000000e+00> : vector<8x128xf32>
    %122 = tpu.matmul %119, %121, %cst_79 {dimension_numbers = #tpu.dot_dimension_numbers<[1], [0], [0], [1], [0, 0, 1, 1], [], []>} : vector<8x128xbf16>, vector<128x128xbf16>, vector<8x128xf32> -> vector<8x128xf32>
    %c10_80 = arith.constant 10 : index
    %c0_81 = arith.constant 0 : index
    %c0_82 = arith.constant 0 : index
    %123 = vector.load %arg6[%c10_80, %c0_81, %c0_82] : memref<12x1x128xf32, #tpu.memory_space<vmem>>, vector<1x1x128xf32>
    %124 = vector.shape_cast %123 : vector<1x1x128xf32> to vector<1x128xf32>
    %125 = vector.broadcast %124 : vector<1x128xf32> to vector<8x128xf32>
    %126 = arith.addf %122, %125 : vector<8x128xf32>
    %cst_83 = arith.constant 0.00999999977 : f32
    %127 = vector.broadcast %cst_83 : f32 to vector<8x128xf32>
    %128 = arith.mulf %127, %126 : vector<8x128xf32>
    %129 = arith.maximumf %126, %128 : vector<8x128xf32>
    %130 = arith.truncf %129 : vector<8x128xf32> to vector<8x128xbf16>
    %c11 = arith.constant 11 : index
    %c0_84 = arith.constant 0 : index
    %c0_85 = arith.constant 0 : index
    %131 = vector.load %arg3[%c11, %c0_84, %c0_85] : memref<12x128x128xbf16, #tpu.memory_space<vmem>>, vector<1x128x128xbf16>
    %132 = vector.shape_cast %131 : vector<1x128x128xbf16> to vector<128x128xbf16>
    %cst_86 = arith.constant dense<0.000000e+00> : vector<8x128xf32>
    %133 = tpu.matmul %130, %132, %cst_86 {dimension_numbers = #tpu.dot_dimension_numbers<[1], [0], [0], [1], [0, 0, 1, 1], [], []>} : vector<8x128xbf16>, vector<128x128xbf16>, vector<8x128xf32> -> vector<8x128xf32>
    %c11_87 = arith.constant 11 : index
    %c0_88 = arith.constant 0 : index
    %c0_89 = arith.constant 0 : index
    %134 = vector.load %arg6[%c11_87, %c0_88, %c0_89] : memref<12x1x128xf32, #tpu.memory_space<vmem>>, vector<1x1x128xf32>
    %135 = vector.shape_cast %134 : vector<1x1x128xf32> to vector<1x128xf32>
    %136 = vector.broadcast %135 : vector<1x128xf32> to vector<8x128xf32>
    %137 = arith.addf %133, %136 : vector<8x128xf32>
    %cst_90 = arith.constant 0.00999999977 : f32
    %138 = vector.broadcast %cst_90 : f32 to vector<8x128xf32>
    %139 = arith.mulf %138, %137 : vector<8x128xf32>
    %140 = arith.maximumf %137, %139 : vector<8x128xf32>
    %141 = arith.truncf %140 : vector<8x128xf32> to vector<8x128xbf16>
    %c0_91 = arith.constant 0 : index
    %c0_92 = arith.constant 0 : index
    %142 = vector.load %arg4[%c0_91, %c0_92] : memref<128x256xbf16, #tpu.memory_space<vmem>>, vector<128x256xbf16>
    %cst_93 = arith.constant dense<0.000000e+00> : vector<8x256xf32>
    %143 = tpu.matmul %141, %142, %cst_93 {dimension_numbers = #tpu.dot_dimension_numbers<[1], [0], [0], [1], [0, 0, 1, 1], [], []>} : vector<8x128xbf16>, vector<128x256xbf16>, vector<8x256xf32> -> vector<8x256xf32>
    %c0_94 = arith.constant 0 : index
    %c0_95 = arith.constant 0 : index
    %144 = vector.load %arg7[%c0_94, %c0_95] : memref<1x256xf32, #tpu.memory_space<vmem>>, vector<1x256xf32>
    %145 = vector.broadcast %144 : vector<1x256xf32> to vector<8x256xf32>
    %146 = arith.addf %143, %145 : vector<8x256xf32>
    %cst_96 = arith.constant 0.00999999977 : f32
    %147 = vector.broadcast %cst_96 : f32 to vector<8x256xf32>
    %148 = arith.mulf %147, %146 : vector<8x256xf32>
    %149 = arith.maximumf %146, %148 : vector<8x256xf32>
    %150 = vector.extract_strided_slice %149 {offsets = [0, 0], sizes = [8, 150], strides = [1, 1]} : vector<8x256xf32> to vector<8x150xf32>
    %c0_97 = arith.constant 0 : index
    %c0_98 = arith.constant 0 : index
    %151 = vector.load %arg8[%c0_97, %c0_98] : memref<8x150xf32, #tpu.memory_space<vmem>>, vector<8x150xf32>
    tpu.vector_store %arg8[%c0_97, %c0_98], %150 {strides = array<i32>} : memref<8x150xf32, #tpu.memory_space<vmem>>, vector<8x150xf32>,
    return
  }
  func.func @transform_0(%arg0: i32) -> (i32, i32) {
    %c0_i32 = arith.constant 0 : i32
    %c0_i32_0 = arith.constant 0 : i32
    return %arg0, %c0_i32 : i32, i32
  }
  func.func @transform_1(%arg0: i32) -> (i32, i32) {
    %c0_i32 = arith.constant 0 : i32
    %c0_i32_0 = arith.constant 0 : i32
    %c0_i32_1 = arith.constant 0 : i32
    return %c0_i32, %c0_i32_0 : i32, i32
  }
  func.func @transform_2(%arg0: i32) -> (i32, i32, i32) {
    %c0_i32 = arith.constant 0 : i32
    %c0_i32_0 = arith.constant 0 : i32
    %c0_i32_1 = arith.constant 0 : i32
    %c0_i32_2 = arith.constant 0 : i32
    return %c0_i32, %c0_i32_0, %c0_i32_1 : i32, i32, i32
  }
  func.func @transform_3(%arg0: i32) -> (i32, i32) {
    %c0_i32 = arith.constant 0 : i32
    %c0_i32_0 = arith.constant 0 : i32
    %c0_i32_1 = arith.constant 0 : i32
    return %c0_i32, %c0_i32_0 : i32, i32
  }
  func.func @transform_4(%arg0: i32) -> (i32, i32) {
    %c0_i32 = arith.constant 0 : i32
    %c0_i32_0 = arith.constant 0 : i32
    %c0_i32_1 = arith.constant 0 : i32
    return %c0_i32, %c0_i32_0 : i32, i32
  }
  func.func @transform_5(%arg0: i32) -> (i32, i32, i32) {
    %c0_i32 = arith.constant 0 : i32
    %c0_i32_0 = arith.constant 0 : i32
    %c0_i32_1 = arith.constant 0 : i32
    %c0_i32_2 = arith.constant 0 : i32
    return %c0_i32, %c0_i32_0, %c0_i32_1 : i32, i32, i32
  }
  func.func @transform_6(%arg0: i32) -> (i32, i32) {
    %c0_i32 = arith.constant 0 : i32
    %c0_i32_0 = arith.constant 0 : i32
    %c0_i32_1 = arith.constant 0 : i32
    return %c0_i32, %c0_i32_0 : i32, i32
  }
  func.func @transform_7(%arg0: i32) -> (i32, i32) {
    %c0_i32 = arith.constant 0 : i32
    %c0_i32_0 = arith.constant 0 : i32
    return %arg0, %c0_i32 : i32, i32
  }
}

</mosaic_0001>

<bundles_post_ra>
// kernel: tpu_custom_call.1
= control target key start
LH: loop header
LB: loop body
LE: loop exit
PB: predicated region body
PF: predicated region fallthrough
CT: control target
= control target key end

     0   :  { %12 = vsyncpa [#allocation3], 0  ;;  %s3613_s0 = inlined_call_operand.hbm [shape: bf16[16,256], index: 0, kind: input, shape index: {}]   ;;  %s3614_s1 = inlined_call_operand.hbm [shape: bf16[256,128], index: 1, kind: input, shape index: {}]   ;;  %s3615_s2 = inlined_call_operand.hbm [shape: bf16[12,128,128], index: 2, kind: input, shape index: {}]   ;;  %s3616_s3 = inlined_call_operand.hbm [shape: bf16[128,256], index: 3, kind: input, shape index: {}]   ;;  %s3617_s4 = inlined_call_operand.vmem [shape: f32[1,128], index: 4, kind: input, shape index: {}]   ;;  %s3618_s5 = inlined_call_operand.vmem [shape: f32[12,1,128], index: 5, kind: input, shape index: {}]   ;;  %s3619_s6 = inlined_call_operand.vmem [shape: f32[1,256], index: 6, kind: input, shape index: {}]   ;;  %s3620_s7 = inlined_call_operand.hbm [shape: f32[16,150], index: 7, kind: output, shape index: {}]  }
   0x1   :  { %14 = vsyncpa [#allocation3 + $0x1], 0 }
   0x2   :  { %15 = vsyncpa [#allocation6], 0 }
   0x3   :  { %16 = vsyncpa [#allocation9], 0 }
   0x4   :  { %17 = vsyncpa [#allocation4], 0 }
   0x5   :  { %19 = vsyncpa [#allocation4 + $0x1], 0  ;;  %s3196_s24 = smov 0   ;;  %s3198_s25 = smov 0  }
   0x6   :  { %s3200_s26 = smov 0   ;;  %s3202_s27 = smov 0  }
   0x7 LB: > { %s3217_s28 = sadd.s32 4294967295, %s3142_s27   ;;  %s2186_s29 = sadd.s32 4294967294, %s3142_s27   ;;  %s3142_s27 = sphi %s3202_s27, %s3646_s27   ;;  %s3138_s26 = sphi %s3200_s26, %s3645_s26   ;;  %s3134_s25 = sphi %s3198_s25, %s3644_s25   ;;  %s3130_s24 = sphi %s3196_s24, %s3643_s24  }
   0x8   : > { %p45_p0 = scmp.ne.s32.totalorder %s3134_s25, %s3130_s24  ;;  %p3621_p1 = scmp.eq.s32.totalorder %s3217_s28, 0 }
   0x9   : > { %p201_p3 = scmp.eq.s32.totalorder %s2186_s29, 1  ;;  %p2187_p5 = scmp.ge.s32.totalorder %s3142_s27, 1 }
   0xa   : > { %p3226_p4 = por %p3621_p1, %p45_p0  ;;  %p208_p7 = scmp.lt.s32.totalorder %s3142_s27, 3 }
   0xb   : > { %p3231_p6 = por %p201_p3, %p45_p0  ;;  %s3144_s10 = smov [#allocation5]  }
   0xc   : > { %s3625_s30 = scalar_select %p3226_p4, 1, 0 }
   0xd   : > { %s3626_s8 = scalar_select %p3231_p6, 1, 0 }
   0xe   : > { %p3236_p8 = pnand %p2187_p5, %p208_p7  ;;  %s220_s11 = sshll.u32 %s3144_s10, 4  ;;  %s3240_s11 = int_to_ptr.vmem [resolvable:$true] %s220_s11 }
   0xf   : > { %3627 = sst [smem:[#allocation15_spill]] %s3626_s8  ;;  %s3145_s13 = smov [#allocation7]  }
  0x10   : > { %s3628_s9 = scalar_select %p3236_p8, 1, 0 }
  0x11   : > { %p2748_p9 = pneg %p3236_p8  ;;  %s233_s14 = sshll.u32 %s3145_s13, 4  ;;  %s3251_s14 = int_to_ptr.vmem [resolvable:$true] %s233_s14 }
  0x12   : > { %s3146_s15 = smov [#allocation8]   ;;  %s2954_s19 = scalar_lea.hbm %s3614_s1, 2048 }
  0x13   : > { %p3247_p11 = pnand %p2748_p9, %p3621_p1  ;;  %s3253_s16 = sshll.u32 %s3146_s15, 4  ;;  %s247_s16 = int_to_ptr.vmem [resolvable:$true] %s3253_s16 }
  0x14   : > { %p2955_p12 = scmp.ne.s32.totalorder %s3614_s1, %s2954_s19  ;;  %p2961_p5 = scmp.lt.u32.totalorder %s2954_s19, %s3614_s1 }
  0x15   : > { %p3263_p13 = pneg %p3247_p11 }
  0x17   : > { %p2957_p0 = pnand %p3263_p13, %p2955_p12 }
  0x19   : > { %p2958_p3 = pneg %p2957_p0 }
  0x1b   : > { %p2963_p7 = pnand %p2961_p5, %p2958_p3 }
  0x1d   : > { %2966 = shalt.err (!%p2963_p7)
}
  0x1e   : > { %s2967_s10 = scalar_lea.vmem %s3240_s11, 2048  ;;  %p2975_p2 = scmp.lt.s32.totalorder %s3240_s11, %s3240_s11 }
  0x1f   : > { %p2968_p9 = scmp.ne.s32.totalorder %s3240_s11, %s2967_s10  ;;  %p2976_p6 = scmp.lt.s32.totalorder %s2967_s10, %s2967_s10 }
  0x21   : > { %p2970_p10 = pnand %p2968_p9, %p3263_p13  ;;  %p2977_p12 = por %p2976_p6, %p2975_p2 }
  0x23   : > { %p2971_p1 = pneg %p2970_p10 }
  0x25   : > { %p2978_p0 = pnand %p2977_p12, %p2971_p1 }
  0x27   : > { %2981 = shalt.err (!%p2978_p0)
}
  0x28   : > { %s3147_s13 = smov 64   ;;  %s3148_s15 = smov 4  }
  0x29   : > { %2751 = dma.hbm_to_vmem [thread:$0]  (!%p3247_p11), %s3614_s1, 2048, %s3240_s11, [#allocation6], %s3147_s13, %s3147_s13, %s3148_s15  }
  0x2a   : > { %s2982_s21 = scalar_lea.hbm %s3615_s2, 12288 }
  0x2b   : > { %p2983_p2 = scmp.ne.s32.totalorder %s3615_s2, %s2982_s21  ;;  %p2989_p10 = scmp.lt.u32.totalorder %s2982_s21, %s3615_s2 }
  0x2d   : > { %p2985_p1 = pnand %p2983_p2, %p3263_p13 }
  0x2f   : > { %p2986_p6 = pneg %p2985_p1 }
  0x31   : > { %p2991_p3 = pnand %p2989_p10, %p2986_p6 }
  0x33   : > { %2994 = shalt.err (!%p2991_p3)
}
  0x34   : > { %s2995_s11 = scalar_lea.vmem %s3251_s14, 12288  ;;  %p3003_p12 = scmp.lt.s32.totalorder %s3251_s14, %s3251_s14 }
  0x35   : > { %p2996_p5 = scmp.ne.s32.totalorder %s3251_s14, %s2995_s11  ;;  %p3004_p0 = scmp.lt.s32.totalorder %s2995_s11, %s2995_s11 }
  0x37   : > { %p2998_p7 = pnand %p2996_p5, %p3263_p13  ;;  %p3005_p2 = por %p3004_p0, %p3003_p12 }
  0x39   : > { %p2999_p9 = pneg %p2998_p7 }
  0x3b   : > { %p3006_p1 = pnand %p3005_p2, %p2999_p9 }
  0x3d   : > { %3009 = shalt.err (!%p3006_p1)
}
  0x3e   : > { %2754 = dma.hbm_to_vmem [thread:$0]  (!%p3247_p11), %s3615_s2, 12288, %s3251_s14, [#allocation6], %s3147_s13, %s3147_s13, %s3148_s15  }
  0x3f   : > { %s3010_s20 = scalar_lea.hbm %s3616_s3, 2048 }
  0x40   : > { %p3011_p6 = scmp.ne.s32.totalorder %s3616_s3, %s3010_s20  ;;  %p3017_p5 = scmp.lt.u32.totalorder %s3010_s20, %s3616_s3 }
  0x42   : > { %p3013_p10 = pnand %p3011_p6, %p3263_p13 }
  0x44   : > { %p3014_p3 = pneg %p3013_p10 }
  0x46   : > { %p3019_p7 = pnand %p3017_p5, %p3014_p3 }
  0x48   : > { %3022 = shalt.err (!%p3019_p7)
}
  0x49   : > { %s3023_s11 = scalar_lea.vmem %s247_s16, 2048  ;;  %p3031_p2 = scmp.lt.s32.totalorder %s247_s16, %s247_s16 }
  0x4a   : > { %p3024_p9 = scmp.ne.s32.totalorder %s247_s16, %s3023_s11  ;;  %p3032_p1 = scmp.lt.s32.totalorder %s3023_s11, %s3023_s11 }
  0x4c   : > { %p3026_p12 = pnand %p3024_p9, %p3263_p13  ;;  %p3033_p4 = por %p3032_p1, %p3031_p2 }
  0x4e   : > { %p3027_p0 = pneg %p3026_p12 }
  0x50   : > { %p3034_p8 = pnand %p3033_p4, %p3027_p0 }
  0x52   : > { %3037 = shalt.err (!%p3034_p8)
}
  0x53   : > { %s3149_s14 = smov 128   ;;  %s3150_s22 = smov 8  }
  0x54   : > { %2757 = dma.hbm_to_vmem [thread:$0]  (!%p3247_p11), %s3616_s3, 2048, %s247_s16, [#allocation9], %s3149_s14, %s3149_s14, %s3150_s22  }
  0x55   : > { %s3327_s8 = sadd.s32 1, %s3142_s27   ;;  %s32_s18 = sadd.s32 1, %s3138_s26 }
  0x56   : > { %s29_s17 = ssub.s32 %s3142_s27, %s3327_s8  ;;  %p39_p8 = scmp.ne.s32.totalorder %s3138_s26, %s3134_s25 }
  0x57   : > { %p30_p4 = scmp.eq.s32.totalorder %s29_s17, 0  ;;  %p40_p13 = scmp.eq.s32.totalorder %s3142_s27, 0 }
  0x58   : > { %p2769_p6 = scmp.lt.s32.totalorder %s3142_s27, 2  ;;  %p3631_p3 = scmp.eq.s32.totalorder %s3217_s28, 1 }
  0x59   : > { %s3337_s19 = scalar_select %p30_p4, %s3138_s26, %s32_s18  }
  0x5a   : > { %p41_p10 = por %p40_p13, %p39_p8  ;;  %p3341_p5 = por %p3631_p3, %p39_p8 }
  0x5b   : > { %s269_s12 = sand.u32 1, %s3138_s26   ;;  %s2360_s21 = sshll.u32 %s3142_s27, 7 }
  0x5c   : > { %s2192_s16 = sshll.u32 %s269_s12, 3  ;;  %s3350_s10 = scalar_lea.hbm %s3613_s0, %s2360_s21 }
  0x5d   : > { %s273_s11 = scalar_lea.vmem [#allocation2], %s2192_s16  ;;  %p3352_p11 = pnand %p2769_p6, %p41_p10 }
  0x5e   : > { %s281_s14 = sshll.u32 %s273_s11, 4  ;;  %s270_s13 = scalar_lea.sflag [#allocation3], %s269_s12  ;;  %s3356_s14 = int_to_ptr.vmem [resolvable:$true] %s281_s14 }
  0x5f   : > { %s3038_s15 = scalar_lea.hbm %s3350_s10, 128  ;;  %p3040_p9 = pneg %p3352_p11 }
  0x60   : > { %p3039_p7 = scmp.ne.s32.totalorder %s3350_s10, %s3038_s15  ;;  %s3043_s21 = scalar_lea.hbm %s3613_s0, 256 }
  0x61   : > { %p3044_p2 = scmp.lt.u32.totalorder %s3350_s10, %s3613_s0  ;;  %p3045_p1 = scmp.lt.u32.totalorder %s3043_s21, %s3038_s15 }
  0x62   : > { %p3041_p12 = pnand %p3040_p9, %p3039_p7  ;;  %p3047_p8 = scmp.lt.u32.totalorder %s3038_s15, %s3350_s10 }
  0x63   : > { %p3046_p4 = por %p3045_p1, %p3044_p2 }
  0x64   : > { %p3042_p0 = pneg %p3041_p12 }
  0x65   : > { %p3048_p13 = por %p3047_p8, %p3046_p4 }
  0x67   : > { %p3049_p6 = pnand %p3048_p13, %p3042_p0 }
  0x69   : > { %3052 = shalt.err (!%p3049_p6)
}
  0x6a   : > { %s3053_s12 = scalar_lea.vmem %s3356_s14, 128  ;;  %s3151_s29 = smov [#allocation2]  }
  0x6b   : > { %p3054_p10 = scmp.ne.s32.totalorder %s3356_s14, %s3053_s12  ;;  %s3058_s11 = sshll.u32 %s3151_s29, 4  ;;  %s3059_s11 = int_to_ptr.vmem [resolvable:$false] %s3058_s11 }
  0x6c   : > { %s3060_s17 = scalar_lea.vmem %s3059_s11, 256  ;;  %p3061_p12 = scmp.lt.s32.totalorder %s3356_s14, %s3059_s11 }
  0x6d   : > { %p3056_p3 = pnand %p3054_p10, %p3040_p9  ;;  %p3062_p2 = scmp.lt.s32.totalorder %s3060_s17, %s3053_s12 }
  0x6f   : > { %p3057_p7 = pneg %p3056_p3  ;;  %p3063_p1 = por %p3062_p2, %p3061_p12 }
  0x71   : > { %p3064_p4 = pnand %p3063_p1, %p3057_p7 }
  0x73   : > { %3067 = shalt.err (!%p3064_p4)
}
  0x74   : > { %2761 = dma.hbm_to_vmem [thread:$0]  (!%p3352_p11), %s3350_s10, 128, %s3356_s14, %s270_s13  }
  0x75   : > { %p3634_p0 = scmp.ne.s32.totalorder %s3628_s9, 0 }
  0x76   : > { %s3386_s15 = sand.u32 (!%p3634_p0), 1, %s3134_s25   ;;  %p3635_p9 = scmp.ne.s32.totalorder (!%p3634_p0), %s3625_s30, 0 }
  0x77   : > { %290 = sbr.rel (%p3634_p0) target bundleno = 3262 (0xcbe), region = 48  ;;  %s2196_s18 = sshll.u32 (!%p3634_p0), %s3386_s15, 3 }
  0x78   : > { %s293_s21 = scalar_lea.sflag (!%p3634_p0), [#allocation3], %s3386_s15  ;;  %s296_s16 = scalar_lea.vmem (!%p3634_p0), [#allocation2], %s2196_s18 }
  0x7e   : > { %3113 = dma.done.wait (%p3635_p9), %s293_s21, 128  }
  0x7f   : > { %3115 = vsyncadd (%p3635_p9), %s293_s21, 4294967168  ;;  %p3636_p8 = scmp.eq.s32.totalorder %s3217_s28, 0 }
  0x81   : > { %3117 = dma.done.wait (%p3636_p8), [#allocation6], 14336   ;;  %p3637_p11 = pmov %p3636_p8 }
  0x82   : > { %p3638_p13 = pmov %p3636_p8 }
  0x83   : > { %3119 = vsyncadd (%p3637_p11), [#allocation6], 4294952960 }
  0x84   : > { %3121 = dma.done.wait (%p3638_p13), [#allocation9], 2048   ;;  %p3639_p6 = pmov %p3636_p8 }
  0x85   : > { %v3152_v0 = vmov 0.0   ;;  %v2816_v1 = vld [vmem:[#allocation5 + $0x40] sm:$0xff]   ;;  %v2818_v3 = vld [vmem:[#allocation5 + $0x48] sm:$0xff]   ;;  %v2820_v5 = vld [vmem:[#allocation5 + $0x50] sm:$0xff]   ;;  %vm3153_vm0 = vmmov 0   ;;  %s2200_s30 = sshll.u32 %s3386_s15, 4 }
  0x86   : > { %3123 = vsyncadd (%p3639_p6), [#allocation9], 4294965248  ;;  %2492 = vmatprep.subr.bf16.mxu1 %v3152_v0  ;;  %v2817_v2 = vld [vmem:[#allocation5] sm:$0xff]   ;;  %2362 = vmatprep.subr.bf16.mxu0 %v2816_v1  ;;  %v2819_v4 = vld [vmem:[#allocation5 + $0x8] sm:$0xff]   ;;  %s2361_s9 = sshll.u32 %s3217_s28, 8  ;;  %s338_s10 = scalar_lea.vmem [#allocation10], %s2200_s30 }
  0x87   : > { %2363 = vmatpush3.bf16.msra.mxu0 %v2817_v2  ;;  %v2821_v6 = vld [vmem:[#allocation5 + $0x10] sm:$0xff]   ;;  %v2822_v7 = vld [vmem:[#allocation5 + $0x58] sm:$0xff]   ;;  %v2824_v9 = vld [vmem:[#allocation5 + $0x60] sm:$0xff]   ;;  %2508 = vmatprep.mubr.msk.bf16.mxu1 %vm3153_vm0, %v3152_v0  ;;  %s2087_s14 = sshll.u32 %s338_s10, 4  ;;  %vm2070_vm1 = vcmask 179200   ;;  %s3569_s23 = scalar_lea.hbm %s3620_s7, %s2361_s9  ;;  %s3571_s14 = int_to_ptr.vmem [resolvable:$true] %s2087_s14 }
  0x88   : > { %2364 = vmatprep.subr.bf16.mxu0 %v2818_v3  ;;  %v2823_v8 = vld [vmem:[#allocation5 + $0x18] sm:$0xff]   ;;  %v2825_v10 = vld [vmem:[#allocation5 + $0x20] sm:$0xff]   ;;  %v2826_v11 = vld [vmem:[#allocation5 + $0x68] sm:$0xff]   ;;  %s2073_s12 = scalar_lea.sflag [#allocation4], %s3386_s15  ;;  %s3068_s28 = scalar_lea.vmem %s3571_s14, 256 }
  0x89   : > { %v340_v12 = vld [vmem:[%s296_s16] sm:$0xff]  ;;  %v2834_v14 = vld [vmem:[#allocation7] sm:$0xff]   ;;  %v2827_v15 = vld [vmem:[#allocation5 + $0x28] sm:$0xff]   ;;  %p3069_p10 = scmp.ne.s32.totalorder %s3571_s14, %s3068_s28  ;;  %s3155_s29 = smov [#allocation10]  }
  0x8a   : > { %v2203_v13 = vcombine.high %v340_v12, %v340_v12  ;;  %v2828_v16 = vld [vmem:[#allocation5 + $0x70] sm:$0xff]   ;;  %2493 = vmatpush3.bf16.msra.mxu1 %v2834_v14  ;;  %v2835_v17 = vld [vmem:[#allocation7 + $0x8] sm:$0xff]   ;;  %v2830_v19 = vld [vmem:[#allocation5 + $0x78] sm:$0xff]   ;;  %v2202_v23 = vcombine.low %v340_v12, %v340_v12  ;;  %s3072_s11 = sshll.u32 %s3155_s29, 4  ;;  %s3073_s11 = int_to_ptr.vmem [resolvable:$false] %s3072_s11 }
  0x8b   : > { %2365 = vmatpush3.bf16.msra.mxu0 %v2819_v4  ;;  %v2829_v18 = vld [vmem:[#allocation5 + $0x30] sm:$0xff]   ;;  %2494 = vmatprep.subr.bf16.mxu1 %v3152_v0  ;;  %v2831_v21 = vld [vmem:[#allocation5 + $0x38] sm:$0xff]   ;;  %v2838_v24 = vld [vmem:[#allocation7 + $0x20] sm:$0xff]   ;;  %p3070_p3 = pnand %p3069_p10, %p3341_p5  ;;  %s3074_s17 = scalar_lea.vmem %s3073_s11, 512 }
  0x8c   : > { %2366 = vmatprep.subr.bf16.mxu0 %v2820_v5  ;;  %515 = vmatprep.mubr.bf16.mxu0 %v2203_v13  ;;  %v2836_v20 = vld [vmem:[#allocation7 + $0x10] sm:$0xff]   ;;  %v2837_v22 = vld [vmem:[#allocation7 + $0x18] sm:$0xff]   ;;  %v2839_v25 = vld [vmem:[#allocation7 + $0x28] sm:$0xff]   ;;  %p3075_p12 = scmp.lt.s32.totalorder %s3571_s14, %s3073_s11  ;;  %p3076_p2 = scmp.lt.s32.totalorder %s3074_s17, %s3068_s28 }
  0x8d   : > { %v2840_v26 = vld [vmem:[#allocation7 + $0x30] sm:$0xff]   ;;  %v2841_v27 = vld [vmem:[#allocation7 + $0x38] sm:$0xff]   ;;  %v2842_v28 = vld [vmem:[#allocation7 + $0x40] sm:$0xff]   ;;  %p3071_p7 = pneg %p3070_p3 }
  0x8e   : > { %2495 = vmatpush3.bf16.msra.mxu1 %v2835_v17  ;;  %v2843_v29 = vld [vmem:[#allocation7 + $0x48] sm:$0xff]   ;;  %v2844_v30 = vld [vmem:[#allocation7 + $0x50] sm:$0xff]   ;;  %v2845_v31 = vld [vmem:[#allocation7 + $0x58] sm:$0xff]   ;;  %p3077_p1 = por %p3076_p2, %p3075_p12 }
  0x8f   : > { %2367 = vmatpush3.bf16.msra.mxu0 %v2821_v6  ;;  %2496 = vmatprep.subr.bf16.mxu1 %v3152_v0  ;;  %v2846_v32 = vld [vmem:[#allocation7 + $0x60] sm:$0xff]   ;;  %v2847_v33 = vld [vmem:[#allocation7 + $0x68] sm:$0xff]   ;;  %v2201_v35 = vld [vmem:[%s3617_s4] ss:$0 sm:$0xff] }
  0x90   : > { %2368 = vmatprep.subr.bf16.mxu0 %v2822_v7  ;;  %v2848_v44 = vld [vmem:[#allocation7 + $0x70] sm:$0xff]   ;;  %v2849_v45 = vld [vmem:[#allocation7 + $0x78] sm:$0xff]   ;;  %v2850_v46 = vld [vmem:[#allocation7 + $0x80] sm:$0xff]   ;;  %p3078_p4 = pnand %p3077_p1, %p3071_p7 }
  0x91   : > { %v2851_v47 = vld [vmem:[#allocation7 + $0x88] sm:$0xff]   ;;  %v2852_v48 = vld [vmem:[#allocation7 + $0x90] sm:$0xff]   ;;  %v2853_v49 = vld [vmem:[#allocation7 + $0x98] sm:$0xff]  }
  0x92   : > { %2497 = vmatpush3.bf16.msra.mxu1 %v2836_v20  ;;  %v2854_v50 = vld [vmem:[#allocation7 + $0xa0] sm:$0xff]   ;;  %v2855_v51 = vld [vmem:[#allocation7 + $0xa8] sm:$0xff]   ;;  %v2220_v52 = vld [vmem:[%s3618_s5] ss:$0 sm:$0xff] }
  0x93   : > { %2369 = vmatpush3.bf16.msra.mxu0 %v2823_v8  ;;  %2498 = vmatprep.subr.bf16.mxu1 %v3152_v0  ;;  %v2856_v61 = vld [vmem:[#allocation7 + $0xb0] sm:$0xff]   ;;  %v2857_v62 = vld [vmem:[#allocation7 + $0xb8] sm:$0xff]   ;;  %v2858_v63 = vld [vmem:[#allocation7 + $0xc0] sm:$0xff]  }
  0x94   : > { %2370 = vmatprep.subr.bf16.mxu0 %v2824_v9  ;;  %v2859_v1 = vld [vmem:[#allocation7 + $0xc8] sm:$0xff]   ;;  %v2860_v2 = vld [vmem:[#allocation7 + $0xd0] sm:$0xff]   ;;  %v2861_v3 = vld [vmem:[#allocation7 + $0xd8] sm:$0xff]  }
  0x95   : > { %v2862_v4 = vld [vmem:[#allocation7 + $0xe0] sm:$0xff]   ;;  %v2863_v5 = vld [vmem:[#allocation7 + $0xe8] sm:$0xff]   ;;  %v2230_v6 = vld [vmem:[%s3618_s5 + $0x1] ss:$0 sm:$0xff] }
  0x96   : > { %2499 = vmatpush3.bf16.msra.mxu1 %v2837_v22  ;;  %v2866_v17 = vld [vmem:[#allocation7 + $0x100] sm:$0xff]   ;;  %v2869_v20 = vld [vmem:[#allocation7 + $0x118] sm:$0xff]   ;;  %v2871_v22 = vld [vmem:[#allocation7 + $0x128] sm:$0xff]  }
  0x97   : > { %2371 = vmatpush3.bf16.msra.mxu0 %v2825_v10  ;;  %2500 = vmatprep.subr.bf16.mxu1 %v3152_v0 }
  0x98   : > { %2372 = vmatprep.subr.bf16.mxu0 %v2826_v11 }
  0x9a   : > { %2501 = vmatpush3.bf16.msra.mxu1 %v2838_v24 }
  0x9b   : > { %2373 = vmatpush3.bf16.msra.mxu0 %v2827_v15  ;;  %2502 = vmatprep.subr.bf16.mxu1 %v3152_v0  ;;  %v2864_v15 = vld [vmem:[#allocation7 + $0xf0] sm:$0xff]  }
  0x9c   : > { %2374 = vmatprep.subr.bf16.mxu0 %v2828_v16  ;;  %v2865_v16 = vld [vmem:[#allocation7 + $0xf8] sm:$0xff]  }
  0x9e   : > { %2503 = vmatpush3.bf16.msra.mxu1 %v2839_v25 }
  0x9f   : > { %2375 = vmatpush3.bf16.msra.mxu0 %v2829_v18  ;;  %2504 = vmatprep.subr.bf16.mxu1 %v3152_v0  ;;  %v2867_v18 = vld [vmem:[#allocation7 + $0x108] sm:$0xff]  }
  0xa0   : > { %2376 = vmatprep.subr.bf16.mxu0 %v2830_v19  ;;  %v2868_v19 = vld [vmem:[#allocation7 + $0x110] sm:$0xff]  }
  0xa2   : > { %2505 = vmatpush3.bf16.msra.mxu1 %v2840_v26 }
  0xa3   : > { %2377 = vmatpush3.bf16.msra.mxu0 %v2831_v21  ;;  %2506 = vmatprep.subr.bf16.mxu1 %v3152_v0  ;;  %v2870_v21 = vld [vmem:[#allocation7 + $0x120] sm:$0xff]  }
  0xa4   : > { %2512 = vmatprep.subr.bf16.mxu0 %v3152_v0 }
  0xa6   : > { %516 = vmatmul.mubr.bf16.vlgmr.msra.gmra.mrb[0].mxu0 %v2202_v23  ;;  %2507 = vmatpush3.bf16.msra.mxu1 %v2841_v27  ;;  %v2240_v23 = vld [vmem:[%s3618_s5 + $0x2] ss:$0 sm:$0xff] }
  0xa7   : > { %2528 = vmatprep.mubr.msk.bf16.mxu0 %vm3153_vm0, %v3152_v0  ;;  %2532 = vmatprep.subr.bf16.mxu1 %v3152_v0 }
  0xa8   : > { %2513 = vmatpush3.bf16.msra.mxu0 %v2842_v28 }
  0xa9   : > { %2514 = vmatprep.subr.bf16.mxu0 %v3152_v0 }
  0xac   : > { %2515 = vmatpush3.bf16.msra.mxu0 %v2843_v29 }
  0xad   : > { %2516 = vmatprep.subr.bf16.mxu0 %v3152_v0 }
  0xb0   : > { %2517 = vmatpush3.bf16.msra.mxu0 %v2844_v30 }
  0xb1   : > { %2518 = vmatprep.subr.bf16.mxu0 %v3152_v0 }
  0xb4   : > { %2519 = vmatpush3.bf16.msra.mxu0 %v2845_v31 }
  0xb5   : > { %2520 = vmatprep.subr.bf16.mxu0 %v3152_v0 }
  0xb8   : > { %2521 = vmatpush3.bf16.msra.mxu0 %v2846_v32  ;;  %v2872_v32 = vld [vmem:[#allocation7 + $0x130] sm:$0xff]  }
  0xb9   : > { %2522 = vmatprep.subr.bf16.mxu0 %v3152_v0 }
  0xbc   : > { %2523 = vmatpush3.bf16.msra.mxu0 %v2847_v33  ;;  %v2873_v33 = vld [vmem:[#allocation7 + $0x138] sm:$0xff]  }
  0xbd   : > { %2524 = vmatprep.subr.bf16.mxu0 %v3152_v0 }
  0xc0   : > { %2525 = vmatpush3.bf16.msra.mxu0 %v2848_v44 }
  0xc1   : > { %2526 = vmatprep.subr.bf16.mxu0 %v3152_v0 }
  0xc4   : > { %2527 = vmatpush3.bf16.msra.mxu0 %v2849_v45 }
  0xc5   : > { %2552 = vmatprep.subr.bf16.mxu0 %v3152_v0 }
 0x179   : > { %v2378_v34 = vpop.f32.mrb[0].mxu0 }
 0x17a   : > { %v2379_v36 = vpop.f32.mrb[1].mxu0 }
 0x17b   : > { %v2380_v37 = vadd.f32 %v2379_v36, %v2378_v34  ;;  %v2381_v38 = vpop.f32.mrb[2].mxu0  ;;  %v2874_v34 = vld [vmem:[#allocation7 + $0x140] sm:$0xff]   ;;  %v2876_v36 = vld [vmem:[#allocation7 + $0x150] sm:$0xff]  }
 0x17c   : > { %v2382_v39 = vpop.f32.mrb[3].mxu0  ;;  %v2878_v38 = vld [vmem:[#allocation7 + $0x160] sm:$0xff]  }
 0x17d   : > { %v518_v40 = vadd.f32 %v2380_v37, %v2201_v35  ;;  %v2875_v35 = vld [vmem:[#allocation7 + $0x148] sm:$0xff]   ;;  %v2877_v37 = vld [vmem:[#allocation7 + $0x158] sm:$0xff]  }
 0x17e   : > { %v2879_v39 = vld [vmem:[#allocation7 + $0x168] sm:$0xff]  }
 0x17f   : > { %v523_v41 = vmul.f32 0.01, %v518_v40 }
 0x181   : > { %v524_v42 = vmax.f32 %v518_v40, %v523_v41  ;;  %v2250_v40 = vld [vmem:[%s3618_s5 + $0x3] ss:$0 sm:$0xff] }
 0x183   : > { %v525_v43 = vpack.c.bf16 %v524_v42, %v524_v42 }
 0x185   : > { %2509 = vmatmul.mubr.bf16.vlgmr.msra.gmra.mrb[0].mxu1 %v525_v43 }
 0x186   : > { %2548 = vmatprep.mubr.msk.bf16.mxu1 %vm3153_vm0, %v3152_v0  ;;  %2533 = vmatpush3.bf16.msra.mxu1 %v2850_v46 }
 0x187   : > { %2534 = vmatprep.subr.bf16.mxu1 %v3152_v0 }
 0x18a   : > { %2535 = vmatpush3.bf16.msra.mxu1 %v2851_v47 }
 0x18b   : > { %2536 = vmatprep.subr.bf16.mxu1 %v3152_v0 }
 0x18e   : > { %2537 = vmatpush3.bf16.msra.mxu1 %v2852_v48 }
 0x18f   : > { %2538 = vmatprep.subr.bf16.mxu1 %v3152_v0 }
 0x192   : > { %2539 = vmatpush3.bf16.msra.mxu1 %v2853_v49  ;;  %v2880_v49 = vld [vmem:[#allocation7 + $0x170] sm:$0xff]  }
 0x193   : > { %2540 = vmatprep.subr.bf16.mxu1 %v3152_v0 }
 0x196   : > { %2541 = vmatpush3.bf16.msra.mxu1 %v2854_v50  ;;  %v2881_v50 = vld [vmem:[#allocation7 + $0x178] sm:$0xff]  }
 0x197   : > { %2542 = vmatprep.subr.bf16.mxu1 %v3152_v0 }
 0x19a   : > { %2543 = vmatpush3.bf16.msra.mxu1 %v2855_v51  ;;  %v2882_v51 = vld [vmem:[#allocation7 + $0x180] sm:$0xff]  }
 0x19b   : > { %2544 = vmatprep.subr.bf16.mxu1 %v3152_v0 }
 0x19e   : > { %2545 = vmatpush3.bf16.msra.mxu1 %v2856_v61 }
 0x19f   : > { %2546 = vmatprep.subr.bf16.mxu1 %v3152_v0 }
 0x1a2   : > { %2547 = vmatpush3.bf16.msra.mxu1 %v2857_v62 }
 0x1a3   : > { %2572 = vmatprep.subr.bf16.mxu1 %v3152_v0 }
 0x258   : > { %v631_v53 = vpop.f32.mrb[0].mxu1 }
 0x259   : > { %v632_v54 = vadd.f32 %v2220_v52, %v631_v53  ;;  %v2510_v55 = vpop.f32.mrb[1].mxu1  ;;  %v2883_v52 = vld [vmem:[#allocation7 + $0x188] sm:$0xff]   ;;  %v2884_v53 = vld [vmem:[#allocation7 + $0x190] sm:$0xff]  }
 0x25a   : > { %v634_v56 = vpop.f32.mrb[2].mxu1  ;;  %v2886_v55 = vld [vmem:[#allocation7 + $0x1a0] sm:$0xff]  }
 0x25b   : > { %v637_v57 = vmul.f32 0.01, %v632_v54  ;;  %v2511_v58 = vpop.f32.mrb[3].mxu1  ;;  %v2887_v56 = vld [vmem:[#allocation7 + $0x1a8] sm:$0xff]  }
 0x25d   : > { %v638_v59 = vmax.f32 %v632_v54, %v637_v57  ;;  %v2885_v54 = vld [vmem:[#allocation7 + $0x198] sm:$0xff]   ;;  %v2260_v57 = vld [vmem:[%s3618_s5 + $0x4] ss:$0 sm:$0xff] }
 0x25f   : > { %v639_v60 = vpack.c.bf16 %v638_v59, %v638_v59 }
 0x261   : > { %2529 = vmatmul.mubr.bf16.vlgmr.msra.gmra.mrb[4].mxu0 %v639_v60 }
 0x262   : > { %2568 = vmatprep.mubr.msk.bf16.mxu0 %vm3153_vm0, %v3152_v0  ;;  %2553 = vmatpush3.bf16.msra.mxu0 %v2858_v63 }
 0x263   : > { %2554 = vmatprep.subr.bf16.mxu0 %v3152_v0 }
 0x266   : > { %2555 = vmatpush3.bf16.msra.mxu0 %v2859_v1 }
 0x267   : > { %2556 = vmatprep.subr.bf16.mxu0 %v3152_v0 }
 0x26a   : > { %2557 = vmatpush3.bf16.msra.mxu0 %v2860_v2 }
 0x26b   : > { %2558 = vmatprep.subr.bf16.mxu0 %v3152_v0 }
 0x26e   : > { %2559 = vmatpush3.bf16.msra.mxu0 %v2861_v3  ;;  %v2888_v3 = vld [vmem:[#allocation7 + $0x1b0] sm:$0xff]  }
 0x26f   : > { %2560 = vmatprep.subr.bf16.mxu0 %v3152_v0 }
 0x272   : > { %2561 = vmatpush3.bf16.msra.mxu0 %v2862_v4  ;;  %v2889_v4 = vld [vmem:[#allocation7 + $0x1b8] sm:$0xff]  }
 0x273   : > { %2562 = vmatprep.subr.bf16.mxu0 %v3152_v0 }
 0x276   : > { %2563 = vmatpush3.bf16.msra.mxu0 %v2863_v5  ;;  %v2890_v5 = vld [vmem:[#allocation7 + $0x1c0] sm:$0xff]  }
 0x277   : > { %2564 = vmatprep.subr.bf16.mxu0 %v3152_v0 }
 0x27a   : > { %2565 = vmatpush3.bf16.msra.mxu0 %v2864_v15 }
 0x27b   : > { %2566 = vmatprep.subr.bf16.mxu0 %v3152_v0 }
 0x27e   : > { %2567 = vmatpush3.bf16.msra.mxu0 %v2865_v16 }
 0x27f   : > { %2592 = vmatprep.subr.bf16.mxu0 %v3152_v0 }
 0x334   : > { %v747_v7 = vpop.f32.mrb[4].mxu0 }
 0x335   : > { %v748_v8 = vadd.f32 %v2230_v6, %v747_v7  ;;  %v2530_v9 = vpop.f32.mrb[5].mxu0  ;;  %v2891_v6 = vld [vmem:[#allocation7 + $0x1c8] sm:$0xff]   ;;  %v2892_v7 = vld [vmem:[#allocation7 + $0x1d0] sm:$0xff]  }
 0x336   : > { %v750_v10 = vpop.f32.mrb[6].mxu0  ;;  %v2894_v9 = vld [vmem:[#allocation7 + $0x1e0] sm:$0xff]  }
 0x337   : > { %v753_v11 = vmul.f32 0.01, %v748_v8  ;;  %v2531_v12 = vpop.f32.mrb[7].mxu0  ;;  %v2895_v10 = vld [vmem:[#allocation7 + $0x1e8] sm:$0xff]  }
 0x339   : > { %v754_v13 = vmax.f32 %v748_v8, %v753_v11  ;;  %v2893_v8 = vld [vmem:[#allocation7 + $0x1d8] sm:$0xff]   ;;  %v2270_v11 = vld [vmem:[%s3618_s5 + $0x5] ss:$0 sm:$0xff] }
 0x33b   : > { %v755_v14 = vpack.c.bf16 %v754_v13, %v754_v13 }
 0x33d   : > { %2549 = vmatmul.mubr.bf16.vlgmr.msra.gmra.mrb[4].mxu1 %v755_v14 }
 0x33e   : > { %2588 = vmatprep.mubr.msk.bf16.mxu1 %vm3153_vm0, %v3152_v0  ;;  %2573 = vmatpush3.bf16.msra.mxu1 %v2866_v17 }
 0x33f   : > { %2574 = vmatprep.subr.bf16.mxu1 %v3152_v0 }
 0x342   : > { %2575 = vmatpush3.bf16.msra.mxu1 %v2867_v18 }
 0x343   : > { %2576 = vmatprep.subr.bf16.mxu1 %v3152_v0 }
 0x346   : > { %2577 = vmatpush3.bf16.msra.mxu1 %v2868_v19 }
 0x347   : > { %2578 = vmatprep.subr.bf16.mxu1 %v3152_v0 }
 0x34a   : > { %2579 = vmatpush3.bf16.msra.mxu1 %v2869_v20  ;;  %v2896_v20 = vld [vmem:[#allocation7 + $0x1f0] sm:$0xff]  }
 0x34b   : > { %2580 = vmatprep.subr.bf16.mxu1 %v3152_v0 }
 0x34e   : > { %2581 = vmatpush3.bf16.msra.mxu1 %v2870_v21  ;;  %v2897_v21 = vld [vmem:[#allocation7 + $0x1f8] sm:$0xff]  }
 0x34f   : > { %2582 = vmatprep.subr.bf16.mxu1 %v3152_v0 }
 0x352   : > { %2583 = vmatpush3.bf16.msra.mxu1 %v2871_v22  ;;  %v2898_v22 = vld [vmem:[#allocation7 + $0x200] sm:$0xff]  }
 0x353   : > { %2584 = vmatprep.subr.bf16.mxu1 %v3152_v0 }
 0x356   : > { %2585 = vmatpush3.bf16.msra.mxu1 %v2872_v32 }
 0x357   : > { %2586 = vmatprep.subr.bf16.mxu1 %v3152_v0 }
 0x35a   : > { %2587 = vmatpush3.bf16.msra.mxu1 %v2873_v33 }
 0x35b   : > { %2612 = vmatprep.subr.bf16.mxu1 %v3152_v0 }
 0x410   : > { %v863_v24 = vpop.f32.mrb[4].mxu1 }
 0x411   : > { %v864_v25 = vadd.f32 %v2240_v23, %v863_v24  ;;  %v2550_v26 = vpop.f32.mrb[5].mxu1  ;;  %v2899_v23 = vld [vmem:[#allocation7 + $0x208] sm:$0xff]   ;;  %v2900_v24 = vld [vmem:[#allocation7 + $0x210] sm:$0xff]  }
 0x412   : > { %v866_v27 = vpop.f32.mrb[6].mxu1  ;;  %v2902_v26 = vld [vmem:[#allocation7 + $0x220] sm:$0xff]  }
 0x413   : > { %v869_v28 = vmul.f32 0.01, %v864_v25  ;;  %v2551_v29 = vpop.f32.mrb[7].mxu1  ;;  %v2903_v27 = vld [vmem:[#allocation7 + $0x228] sm:$0xff]  }
 0x415   : > { %v870_v30 = vmax.f32 %v864_v25, %v869_v28  ;;  %v2901_v25 = vld [vmem:[#allocation7 + $0x218] sm:$0xff]   ;;  %v2280_v28 = vld [vmem:[%s3618_s5 + $0x6] ss:$0 sm:$0xff] }
 0x417   : > { %v871_v31 = vpack.c.bf16 %v870_v30, %v870_v30 }
 0x419   : > { %2569 = vmatmul.mubr.bf16.vlgmr.msra.gmra.mrb[8].mxu0 %v871_v31 }
 0x41a   : > { %2608 = vmatprep.mubr.msk.bf16.mxu0 %vm3153_vm0, %v3152_v0  ;;  %2593 = vmatpush3.bf16.msra.mxu0 %v2874_v34 }
 0x41b   : > { %2594 = vmatprep.subr.bf16.mxu0 %v3152_v0 }
 0x41e   : > { %2595 = vmatpush3.bf16.msra.mxu0 %v2875_v35 }
 0x41f   : > { %2596 = vmatprep.subr.bf16.mxu0 %v3152_v0 }
 0x422   : > { %2597 = vmatpush3.bf16.msra.mxu0 %v2876_v36 }
 0x423   : > { %2598 = vmatprep.subr.bf16.mxu0 %v3152_v0 }
 0x426   : > { %2599 = vmatpush3.bf16.msra.mxu0 %v2877_v37  ;;  %v2904_v37 = vld [vmem:[#allocation7 + $0x230] sm:$0xff]  }
 0x427   : > { %2600 = vmatprep.subr.bf16.mxu0 %v3152_v0 }
 0x42a   : > { %2601 = vmatpush3.bf16.msra.mxu0 %v2878_v38  ;;  %v2905_v38 = vld [vmem:[#allocation7 + $0x238] sm:$0xff]  }
 0x42b   : > { %2602 = vmatprep.subr.bf16.mxu0 %v3152_v0 }
 0x42e   : > { %2603 = vmatpush3.bf16.msra.mxu0 %v2879_v39  ;;  %v2906_v39 = vld [vmem:[#allocation7 + $0x240] sm:$0xff]  }
 0x42f   : > { %2604 = vmatprep.subr.bf16.mxu0 %v3152_v0 }
 0x432   : > { %2605 = vmatpush3.bf16.msra.mxu0 %v2880_v49 }
 0x433   : > { %2606 = vmatprep.subr.bf16.mxu0 %v3152_v0 }
 0x436   : > { %2607 = vmatpush3.bf16.msra.mxu0 %v2881_v50 }
 0x437   : > { %2632 = vmatprep.subr.bf16.mxu0 %v3152_v0 }
 0x4ec   : > { %v979_v41 = vpop.f32.mrb[8].mxu0 }
 0x4ed   : > { %v980_v42 = vadd.f32 %v2250_v40, %v979_v41  ;;  %v2570_v43 = vpop.f32.mrb[9].mxu0  ;;  %v2907_v40 = vld [vmem:[#allocation7 + $0x248] sm:$0xff]   ;;  %v2908_v41 = vld [vmem:[#allocation7 + $0x250] sm:$0xff]  }
 0x4ee   : > { %v982_v44 = vpop.f32.mrb[10].mxu0  ;;  %v2910_v43 = vld [vmem:[#allocation7 + $0x260] sm:$0xff]  }
 0x4ef   : > { %v985_v45 = vmul.f32 0.01, %v980_v42  ;;  %v2571_v46 = vpop.f32.mrb[11].mxu0  ;;  %v2911_v44 = vld [vmem:[#allocation7 + $0x268] sm:$0xff]  }
 0x4f1   : > { %v986_v47 = vmax.f32 %v980_v42, %v985_v45  ;;  %v2909_v42 = vld [vmem:[#allocation7 + $0x258] sm:$0xff]   ;;  %v2290_v45 = vld [vmem:[%s3618_s5 + $0x7] ss:$0 sm:$0xff] }
 0x4f3   : > { %v987_v48 = vpack.c.bf16 %v986_v47, %v986_v47 }
 0x4f5   : > { %2589 = vmatmul.mubr.bf16.vlgmr.msra.gmra.mrb[8].mxu1 %v987_v48 }
 0x4f6   : > { %2628 = vmatprep.mubr.msk.bf16.mxu1 %vm3153_vm0, %v3152_v0  ;;  %2613 = vmatpush3.bf16.msra.mxu1 %v2882_v51 }
 0x4f7   : > { %2614 = vmatprep.subr.bf16.mxu1 %v3152_v0 }
 0x4fa   : > { %2615 = vmatpush3.bf16.msra.mxu1 %v2883_v52 }
 0x4fb   : > { %2616 = vmatprep.subr.bf16.mxu1 %v3152_v0 }
 0x4fe   : > { %2617 = vmatpush3.bf16.msra.mxu1 %v2884_v53 }
 0x4ff   : > { %2618 = vmatprep.subr.bf16.mxu1 %v3152_v0 }
 0x502   : > { %2619 = vmatpush3.bf16.msra.mxu1 %v2885_v54  ;;  %v2912_v54 = vld [vmem:[#allocation7 + $0x270] sm:$0xff]  }
 0x503   : > { %2620 = vmatprep.subr.bf16.mxu1 %v3152_v0 }
 0x506   : > { %2621 = vmatpush3.bf16.msra.mxu1 %v2886_v55  ;;  %v2913_v55 = vld [vmem:[#allocation7 + $0x278] sm:$0xff]  }
 0x507   : > { %2622 = vmatprep.subr.bf16.mxu1 %v3152_v0 }
 0x50a   : > { %2623 = vmatpush3.bf16.msra.mxu1 %v2887_v56  ;;  %v2914_v56 = vld [vmem:[#allocation7 + $0x280] sm:$0xff]  }
 0x50b   : > { %2624 = vmatprep.subr.bf16.mxu1 %v3152_v0 }
 0x50e   : > { %2625 = vmatpush3.bf16.msra.mxu1 %v2888_v3 }
 0x50f   : > { %2626 = vmatprep.subr.bf16.mxu1 %v3152_v0 }
 0x512   : > { %2627 = vmatpush3.bf16.msra.mxu1 %v2889_v4 }
 0x513   : > { %2652 = vmatprep.subr.bf16.mxu1 %v3152_v0 }
 0x5c8   : > { %v1095_v58 = vpop.f32.mrb[8].mxu1 }
 0x5c9   : > { %v1096_v59 = vadd.f32 %v2260_v57, %v1095_v58  ;;  %v2590_v60 = vpop.f32.mrb[9].mxu1  ;;  %v2915_v57 = vld [vmem:[#allocation7 + $0x288] sm:$0xff]   ;;  %v2916_v58 = vld [vmem:[#allocation7 + $0x290] sm:$0xff]  }
 0x5ca   : > { %v1098_v61 = vpop.f32.mrb[10].mxu1  ;;  %v2918_v60 = vld [vmem:[#allocation7 + $0x2a0] sm:$0xff]  }
 0x5cb   : > { %v1101_v62 = vmul.f32 0.01, %v1096_v59  ;;  %v2591_v63 = vpop.f32.mrb[11].mxu1  ;;  %v2919_v61 = vld [vmem:[#allocation7 + $0x2a8] sm:$0xff]  }
 0x5cd   : > { %v1102_v1 = vmax.f32 %v1096_v59, %v1101_v62  ;;  %v2917_v59 = vld [vmem:[#allocation7 + $0x298] sm:$0xff]  }
 0x5ce   : > { %v2300_v62 = vld [vmem:[%s3618_s5 + $0x8] ss:$0 sm:$0xff] }
 0x5cf   : > { %v1103_v2 = vpack.c.bf16 %v1102_v1, %v1102_v1 }
 0x5d1   : > { %2609 = vmatmul.mubr.bf16.vlgmr.msra.gmra.mrb[12].mxu0 %v1103_v2 }
 0x5d2   : > { %2648 = vmatprep.mubr.msk.bf16.mxu0 %vm3153_vm0, %v3152_v0  ;;  %2633 = vmatpush3.bf16.msra.mxu0 %v2890_v5 }
 0x5d3   : > { %2634 = vmatprep.subr.bf16.mxu0 %v3152_v0 }
 0x5d6   : > { %2635 = vmatpush3.bf16.msra.mxu0 %v2891_v6 }
 0x5d7   : > { %2636 = vmatprep.subr.bf16.mxu0 %v3152_v0 }
 0x5da   : > { %2637 = vmatpush3.bf16.msra.mxu0 %v2892_v7 }
 0x5db   : > { %2638 = vmatprep.subr.bf16.mxu0 %v3152_v0 }
 0x5de   : > { %2639 = vmatpush3.bf16.msra.mxu0 %v2893_v8  ;;  %v2920_v8 = vld [vmem:[#allocation7 + $0x2b0] sm:$0xff]  }
 0x5df   : > { %2640 = vmatprep.subr.bf16.mxu0 %v3152_v0 }
 0x5e2   : > { %2641 = vmatpush3.bf16.msra.mxu0 %v2894_v9  ;;  %v2921_v9 = vld [vmem:[#allocation7 + $0x2b8] sm:$0xff]  }
 0x5e3   : > { %2642 = vmatprep.subr.bf16.mxu0 %v3152_v0 }
 0x5e6   : > { %2643 = vmatpush3.bf16.msra.mxu0 %v2895_v10  ;;  %v2922_v10 = vld [vmem:[#allocation7 + $0x2c0] sm:$0xff]  }
 0x5e7   : > { %2644 = vmatprep.subr.bf16.mxu0 %v3152_v0 }
 0x5ea   : > { %2645 = vmatpush3.bf16.msra.mxu0 %v2896_v20 }
 0x5eb   : > { %2646 = vmatprep.subr.bf16.mxu0 %v3152_v0 }
 0x5ee   : > { %2647 = vmatpush3.bf16.msra.mxu0 %v2897_v21 }
 0x5ef   : > { %2672 = vmatprep.subr.bf16.mxu0 %v3152_v0 }
 0x6a4   : > { %v1211_v12 = vpop.f32.mrb[12].mxu0 }
 0x6a5   : > { %v1212_v13 = vadd.f32 %v2270_v11, %v1211_v12  ;;  %v2610_v14 = vpop.f32.mrb[13].mxu0  ;;  %v2923_v11 = vld [vmem:[#allocation7 + $0x2c8] sm:$0xff]   ;;  %v2924_v12 = vld [vmem:[#allocation7 + $0x2d0] sm:$0xff]  }
 0x6a6   : > { %v1214_v15 = vpop.f32.mrb[14].mxu0  ;;  %v2926_v14 = vld [vmem:[#allocation7 + $0x2e0] sm:$0xff]  }
 0x6a7   : > { %v1217_v16 = vmul.f32 0.01, %v1212_v13  ;;  %v2611_v17 = vpop.f32.mrb[15].mxu0  ;;  %v2927_v15 = vld [vmem:[#allocation7 + $0x2e8] sm:$0xff]  }
 0x6a9   : > { %v1218_v18 = vmax.f32 %v1212_v13, %v1217_v16  ;;  %v2925_v13 = vld [vmem:[#allocation7 + $0x2d8] sm:$0xff]  }
 0x6aa   : > { %v2310_v16 = vld [vmem:[%s3618_s5 + $0x9] ss:$0 sm:$0xff] }
 0x6ab   : > { %v1219_v19 = vpack.c.bf16 %v1218_v18, %v1218_v18 }
 0x6ad   : > { %2629 = vmatmul.mubr.bf16.vlgmr.msra.gmra.mrb[12].mxu1 %v1219_v19 }
 0x6ae   : > { %2668 = vmatprep.mubr.msk.bf16.mxu1 %vm3153_vm0, %v3152_v0  ;;  %2653 = vmatpush3.bf16.msra.mxu1 %v2898_v22 }
 0x6af   : > { %2654 = vmatprep.subr.bf16.mxu1 %v3152_v0 }
 0x6b2   : > { %2655 = vmatpush3.bf16.msra.mxu1 %v2899_v23 }
 0x6b3   : > { %2656 = vmatprep.subr.bf16.mxu1 %v3152_v0 }
 0x6b6   : > { %2657 = vmatpush3.bf16.msra.mxu1 %v2900_v24 }
 0x6b7   : > { %2658 = vmatprep.subr.bf16.mxu1 %v3152_v0 }
 0x6ba   : > { %2659 = vmatpush3.bf16.msra.mxu1 %v2901_v25  ;;  %v2928_v25 = vld [vmem:[#allocation7 + $0x2f0] sm:$0xff]  }
 0x6bb   : > { %2660 = vmatprep.subr.bf16.mxu1 %v3152_v0 }
 0x6be   : > { %2661 = vmatpush3.bf16.msra.mxu1 %v2902_v26  ;;  %v2929_v26 = vld [vmem:[#allocation7 + $0x2f8] sm:$0xff]  }
 0x6bf   : > { %2662 = vmatprep.subr.bf16.mxu1 %v3152_v0 }
 0x6c2   : > { %2663 = vmatpush3.bf16.msra.mxu1 %v2903_v27  ;;  %v2930_v27 = vld [vmem:[#allocation8] ss:$8 sps:$4 sm:$0xff]  }
 0x6c3   : > { %2664 = vmatprep.subr.bf16.mxu1 %v3152_v0 }
 0x6c6   : > { %2665 = vmatpush3.bf16.msra.mxu1 %v2904_v37  ;;  %v2945_v37 = vld [vmem:[#allocation8 + $0x50] ss:$8 sps:$4 sm:$0xff]  }
 0x6c7   : > { %2666 = vmatprep.subr.bf16.mxu1 %v3152_v0 }
 0x6ca   : > { %2667 = vmatpush3.bf16.msra.mxu1 %v2905_v38  ;;  %v2320_v38 = vld [vmem:[%s3618_s5 + $0xa] ss:$0 sm:$0xff] }
 0x6cb   : > { %2692 = vmatprep.subr.bf16.mxu1 %v3152_v0 }
 0x780   : > { %v1327_v29 = vpop.f32.mrb[12].mxu1 }
 0x781   : > { %v1328_v30 = vadd.f32 %v2280_v28, %v1327_v29  ;;  %v2630_v31 = vpop.f32.mrb[13].mxu1  ;;  %v2932_v28 = vld [vmem:[#allocation8 + $0x4] ss:$8 sps:$4 sm:$0xff]   ;;  %v2935_v29 = vld [vmem:[#allocation8 + $0x14] ss:$8 sps:$4 sm:$0xff]  }
 0x782   : > { %v1330_v32 = vpop.f32.mrb[14].mxu1  ;;  %v2938_v31 = vld [vmem:[#allocation8 + $0x24] ss:$8 sps:$4 sm:$0xff]  }
 0x783   : > { %v1333_v33 = vmul.f32 0.01, %v1328_v30  ;;  %v2631_v34 = vpop.f32.mrb[15].mxu1  ;;  %v2936_v32 = vld [vmem:[#allocation8 + $0x20] ss:$8 sps:$4 sm:$0xff]  }
 0x784   : > { %v2939_v34 = vld [vmem:[#allocation8 + $0x30] ss:$8 sps:$4 sm:$0xff]  }
 0x785   : > { %v1334_v35 = vmax.f32 %v1328_v30, %v1333_v33  ;;  %v2933_v30 = vld [vmem:[#allocation8 + $0x10] ss:$8 sps:$4 sm:$0xff]   ;;  %v2941_v33 = vld [vmem:[#allocation8 + $0x34] ss:$8 sps:$4 sm:$0xff]  }
 0x787   : > { %v1335_v36 = vpack.c.bf16 %v1334_v35, %v1334_v35  ;;  %v2944_v35 = vld [vmem:[#allocation8 + $0x44] ss:$8 sps:$4 sm:$0xff]  }
 0x789   : > { %2649 = vmatmul.mubr.bf16.vlgmr.msra.gmra.mrb[16].mxu0 %v1335_v36  ;;  %v2947_v36 = vld [vmem:[#allocation8 + $0x54] ss:$8 sps:$4 sm:$0xff]  }
 0x78a   : > { %2688 = vmatprep.mubr.msk.bf16.mxu0 %vm3153_vm0, %v3152_v0  ;;  %2673 = vmatpush3.bf16.msra.mxu0 %v2906_v39 }
 0x78b   : > { %2674 = vmatprep.subr.bf16.mxu0 %v3152_v0 }
 0x78e   : > { %2675 = vmatpush3.bf16.msra.mxu0 %v2907_v40 }
 0x78f   : > { %2676 = vmatprep.subr.bf16.mxu0 %v3152_v0 }
 0x792   : > { %2677 = vmatpush3.bf16.msra.mxu0 %v2908_v41 }
 0x793   : > { %2678 = vmatprep.subr.bf16.mxu0 %v3152_v0 }
 0x796   : > { %2679 = vmatpush3.bf16.msra.mxu0 %v2909_v42 }
 0x797   : > { %2680 = vmatprep.subr.bf16.mxu0 %v3152_v0 }
 0x79a   : > { %2681 = vmatpush3.bf16.msra.mxu0 %v2910_v43 }
 0x79b   : > { %2682 = vmatprep.subr.bf16.mxu0 %v3152_v0 }
 0x79e   : > { %2683 = vmatpush3.bf16.msra.mxu0 %v2911_v44 }
 0x79f   : > { %2684 = vmatprep.subr.bf16.mxu0 %v3152_v0 }
 0x7a2   : > { %2685 = vmatpush3.bf16.msra.mxu0 %v2912_v54 }
 0x7a3   : > { %2686 = vmatprep.subr.bf16.mxu0 %v3152_v0 }
 0x7a6   : > { %2687 = vmatpush3.bf16.msra.mxu0 %v2913_v55 }
 0x7a7   : > { %2712 = vmatprep.subr.bf16.mxu0 %v3152_v0 }
 0x85c   : > { %v1443_v46 = vpop.f32.mrb[16].mxu0 }
 0x85d   : > { %v1444_v47 = vadd.f32 %v2290_v45, %v1443_v46  ;;  %v2650_v48 = vpop.f32.mrb[17].mxu0 }
 0x85e   : > { %v1446_v49 = vpop.f32.mrb[18].mxu0  ;;  %v2948_v48 = vld [vmem:[#allocation8 + $0x60] ss:$8 sps:$4 sm:$0xff]  }
 0x85f   : > { %v1449_v50 = vmul.f32 0.01, %v1444_v47  ;;  %v2651_v51 = vpop.f32.mrb[19].mxu0  ;;  %v2953_v49 = vld [vmem:[#allocation8 + $0x74] ss:$8 sps:$4 sm:$0xff]  }
 0x860   : > { %v3154_v51 = vmov 0  }
 0x861   : > { %v1450_v52 = vmax.f32 %v1444_v47, %v1449_v50  ;;  %v2950_v47 = vld [vmem:[#allocation8 + $0x64] ss:$8 sps:$4 sm:$0xff]   ;;  %v2951_v50 = vld [vmem:[#allocation8 + $0x70] ss:$8 sps:$4 sm:$0xff]  }
 0x863   : > { %v1451_v53 = vpack.c.bf16 %v1450_v52, %v1450_v52  ;;  %v2330_v52 = vld [vmem:[%s3618_s5 + $0xb] ss:$0 sm:$0xff] }
 0x865   : > { %2669 = vmatmul.mubr.bf16.vlgmr.msra.gmra.mrb[16].mxu1 %v1451_v53 }
 0x866   : > { %2708 = vmatprep.mubr.msk.bf16.mxu1 %vm3153_vm0, %v3152_v0  ;;  %2693 = vmatpush3.bf16.msra.mxu1 %v2914_v56 }
 0x867   : > { %2694 = vmatprep.subr.bf16.mxu1 %v3152_v0 }
 0x86a   : > { %2695 = vmatpush3.bf16.msra.mxu1 %v2915_v57 }
 0x86b   : > { %2696 = vmatprep.subr.bf16.mxu1 %v3152_v0 }
 0x86e   : > { %2697 = vmatpush3.bf16.msra.mxu1 %v2916_v58 }
 0x86f   : > { %2698 = vmatprep.subr.bf16.mxu1 %v3152_v0 }
 0x872   : > { %2699 = vmatpush3.bf16.msra.mxu1 %v2917_v59 }
 0x873   : > { %2700 = vmatprep.subr.bf16.mxu1 %v3152_v0 }
 0x876   : > { %2701 = vmatpush3.bf16.msra.mxu1 %v2918_v60 }
 0x877   : > { %2702 = vmatprep.subr.bf16.mxu1 %v3152_v0 }
 0x87a   : > { %2703 = vmatpush3.bf16.msra.mxu1 %v2919_v61  ;;  %v1934_v61 = vlaneseq }
 0x87b   : > { %2704 = vmatprep.subr.bf16.mxu1 %v3152_v0 }
 0x87e   : > { %2705 = vmatpush3.bf16.msra.mxu1 %v2920_v8 }
 0x87f   : > { %2706 = vmatprep.subr.bf16.mxu1 %v3152_v0 }
 0x882   : > { %2707 = vmatpush3.bf16.msra.mxu1 %v2921_v9 }
 0x883   : > { %2024 = vmatprep.subr.bf16.mxu1 %v2932_v28 }
 0x938   : > { %v1559_v63 = vpop.f32.mrb[16].mxu1 }
 0x939   : > { %v1560_v1 = vadd.f32 %v2300_v62, %v1559_v63  ;;  %v2670_v2 = vpop.f32.mrb[17].mxu1  ;;  %v1935_v62 = vshrl.u32 %v1934_v61, 7 }
 0x93a   : > { %v1562_v3 = vpop.f32.mrb[18].mxu1 }
 0x93b   : > { %v1565_v4 = vmul.f32 0.01, %v1560_v1  ;;  %v2671_v5 = vpop.f32.mrb[19].mxu1  ;;  %v1936_v63 = vsub.s32 0, %v1935_v62  ;;  %v1940_v2 = vsub.s32 1, %v1935_v62 }
 0x93d   : > { %v1566_v6 = vmax.f32 %v1560_v1, %v1565_v4  ;;  %v1932_v1 = vld [vmem:[%s3619_s6] sm:$0x3] }
 0x93e   : > { %v1937_v3 = vrot.slane %v1932_v1, %v1936_v63  ;;  %v1941_v4 = vrot.slane %v1932_v1, %v1940_v2 }
 0x93f   : > { %v1567_v7 = vpack.c.bf16 %v1566_v6, %v1566_v6 }
 0x941   : > { %2689 = vmatmul.mubr.bf16.vlgmr.msra.gmra.mrb[20].mxu0 %v1567_v7 }
 0x942   : > { %2728 = vmatprep.mubr.msk.bf16.mxu0 %vm3153_vm0, %v3152_v0  ;;  %2713 = vmatpush3.bf16.msra.mxu0 %v2922_v10 }
 0x943   : > { %2714 = vmatprep.subr.bf16.mxu0 %v3152_v0 }
 0x946   : > { %2715 = vmatpush3.bf16.msra.mxu0 %v2923_v11 }
 0x947   : > { %2716 = vmatprep.subr.bf16.mxu0 %v3152_v0 }
 0x94a   : > { %2717 = vmatpush3.bf16.msra.mxu0 %v2924_v12 }
 0x94b   : > { %2718 = vmatprep.subr.bf16.mxu0 %v3152_v0 }
 0x94e   : > { %2719 = vmatpush3.bf16.msra.mxu0 %v2925_v13 }
 0x94f   : > { %2720 = vmatprep.subr.bf16.mxu0 %v3152_v0 }
 0x952   : > { %2721 = vmatpush3.bf16.msra.mxu0 %v2926_v14 }
 0x953   : > { %2722 = vmatprep.subr.bf16.mxu0 %v3152_v0 }
 0x956   : > { %2723 = vmatpush3.bf16.msra.mxu0 %v2927_v15 }
 0x957   : > { %2724 = vmatprep.subr.bf16.mxu0 %v3152_v0 }
 0x95a   : > { %2725 = vmatpush3.bf16.msra.mxu0 %v2928_v25 }
 0x95b   : > { %2726 = vmatprep.subr.bf16.mxu0 %v3152_v0  ;;  %v2942_v0 = vld [vmem:[#allocation8 + $0x40] ss:$8 sps:$4 sm:$0xff]  }
 0x95e   : > { %2727 = vmatpush3.bf16.msra.mxu0 %v2929_v26 }
 0xa14   : > { %v1675_v17 = vpop.f32.mrb[20].mxu0 }
 0xa15   : > { %v1676_v18 = vadd.f32 %v2310_v16, %v1675_v17  ;;  %v2690_v19 = vpop.f32.mrb[21].mxu0 }
 0xa16   : > { %v1678_v20 = vpop.f32.mrb[22].mxu0 }
 0xa17   : > { %v1681_v21 = vmul.f32 0.01, %v1676_v18  ;;  %v2691_v22 = vpop.f32.mrb[23].mxu0 }
 0xa19   : > { %v1682_v23 = vmax.f32 %v1676_v18, %v1681_v21 }
 0xa1b   : > { %v1683_v24 = vpack.c.bf16 %v1682_v23, %v1682_v23 }
 0xa1d   : > { %2709 = vmatmul.mubr.bf16.vlgmr.msra.gmra.mrb[20].mxu1 %v1683_v24 }
 0xa1e   : > { %2025 = vmatpush1.bf16.msra.mxu1 %v2930_v27  ;;  %2056 = vmatprep.mubr.bf16.mxu1 %v3154_v51 }
 0xa1f   : > { %2026 = vmatprep.subr.bf16.mxu1 %v2935_v29 }
 0xa22   : > { %2027 = vmatpush1.bf16.msra.mxu1 %v2933_v30 }
 0xa23   : > { %2028 = vmatprep.subr.bf16.mxu1 %v2938_v31 }
 0xa26   : > { %2029 = vmatpush1.bf16.msra.mxu1 %v2936_v32 }
 0xa27   : > { %2030 = vmatprep.subr.bf16.mxu1 %v2941_v33 }
 0xa2a   : > { %2031 = vmatpush1.bf16.msra.mxu1 %v2939_v34 }
 0xa2b   : > { %2032 = vmatprep.subr.bf16.mxu1 %v2944_v35 }
 0xa2e   : > { %2033 = vmatpush1.bf16.msra.mxu1 %v2942_v0 }
 0xa2f   : > { %2034 = vmatprep.subr.bf16.mxu1 %v2947_v36 }
 0xa32   : > { %2035 = vmatpush1.bf16.msra.mxu1 %v2945_v37 }
 0xa33   : > { %2036 = vmatprep.subr.bf16.mxu1 %v2950_v47 }
 0xa36   : > { %2037 = vmatpush1.bf16.msra.mxu1 %v2948_v48 }
 0xa37   : > { %2038 = vmatprep.subr.bf16.mxu1 %v2953_v49 }
 0xa3a   : > { %2039 = vmatpush1.bf16.msra.mxu1 %v2951_v50 }
 0xaf0   : > { %v1791_v39 = vpop.f32.mrb[20].mxu1 }
 0xaf1   : > { %v1792_v40 = vadd.f32 %v2320_v38, %v1791_v39  ;;  %v2710_v41 = vpop.f32.mrb[21].mxu1 }
 0xaf2   : > { %v1794_v42 = vpop.f32.mrb[22].mxu1 }
 0xaf3   : > { %v1797_v43 = vmul.f32 0.01, %v1792_v40  ;;  %v2711_v44 = vpop.f32.mrb[23].mxu1 }
 0xaf5   : > { %v1798_v45 = vmax.f32 %v1792_v40, %v1797_v43 }
 0xaf7   : > { %v1799_v46 = vpack.c.bf16 %v1798_v45, %v1798_v45 }
 0xaf9   : > { %2729 = vmatmul.mubr.bf16.vlgmr.msra.gmra.mrb[24].mxu0 %v1799_v46 }
 0xbcc   : > { %v1907_v53 = vpop.f32.mrb[24].mxu0 }
 0xbcd   : > { %v1908_v54 = vadd.f32 %v2330_v52, %v1907_v53  ;;  %v2730_v55 = vpop.f32.mrb[25].mxu0 }
 0xbce   : > { %v1910_v56 = vpop.f32.mrb[26].mxu0 }
 0xbcf   : > { %v1913_v57 = vmul.f32 0.01, %v1908_v54  ;;  %v2731_v58 = vpop.f32.mrb[27].mxu0 }
 0xbd1   : > { %v1914_v59 = vmax.f32 %v1908_v54, %v1913_v57 }
 0xbd3   : > { %v1915_v60 = vpack.c.bf16 %v1914_v59, %v1914_v59 }
 0xbd5   : > { %2057 = vmatmul.mubr.bf16.vlgmr.msra.gmra.mrb[24].mxu1 %v1915_v60 }
 0xca8   : > { %v2058_v5 = vpop.f32.mrb[24].mxu1 }
 0xca9   : > { %v2059_v6 = vadd.f32 %v2058_v5, %v1937_v3  ;;  %v2060_v7 = vpop.f32.mrb[25].mxu1 }
 0xcaa   : > { %v2061_v8 = vadd.f32 %v2060_v7, %v1941_v4  ;;  %v2062_v9 = vpop.f32.mrb[26].mxu1 }
 0xcab   : > { %v2065_v10 = vmul.f32 0.01, %v2059_v6  ;;  %v2063_v11 = vpop.f32.mrb[27].mxu1 }
 0xcac   : > { %v2066_v12 = vmul.f32 0.01, %v2061_v8 }
 0xcad   : > { %v2067_v13 = vmax.f32 %v2059_v6, %v2065_v10 }
 0xcae   : > { %v2068_v14 = vmax.f32 %v2061_v8, %v2066_v12 }
 0xcaf   : > { %2069 = vst [vmem:[%s338_s10] sm:$0xff] %v2067_v13 }
 0xcb0   : > { %2071 = vst.msk [vmem:[%s338_s10 + $0x8] sm:$0xff] %vm2070_vm1, %v2068_v14 }
 0xcb1   : > { %3081 = shalt.err (!%p3078_p4)
}
 0xcb2   : > { %s3082_s15 = scalar_lea.hbm %s3569_s23, 256  ;;  %s3086_s16 = scalar_lea.hbm %s3620_s7, 512 }
 0xcb3   : > { %p3083_p0 = scmp.ne.s32.totalorder %s3569_s23, %s3082_s15  ;;  %p3087_p11 = scmp.lt.u32.totalorder %s3569_s23, %s3620_s7 }
 0xcb4   : > { %p3088_p13 = scmp.lt.u32.totalorder %s3086_s16, %s3082_s15  ;;  %p3090_p10 = scmp.lt.u32.totalorder %s3082_s15, %s3569_s23 }
 0xcb5   : > { %p3084_p9 = pnand %p3083_p0, %p3341_p5 }
 0xcb6   : > { %p3089_p6 = por %p3088_p13, %p3087_p11 }
 0xcb7   : > { %p3085_p8 = pneg %p3084_p9 }
 0xcb8   : > { %p3091_p3 = por %p3090_p10, %p3089_p6 }
 0xcba   : > { %p3092_p7 = pnand %p3091_p3, %p3085_p8 }
 0xcbc   : > { %3095 = shalt.err (!%p3092_p7)
}
 0xcbd   : > { %2746 = dma.vmem_to_hbm [thread:$0]  (%p3341_p5), %s3571_s14, 256, %s3569_s23, %s2073_s12  }
 0xcbe PF: > { %s3640_s10 = sld [smem:[#allocation15_spill]]  ;;  %s2099_s22 = sand.u32 1, %s3130_s24  }
 0xcbf   : > { %p3642_p2 = scmp.ge.s32.totalorder %s3142_s27, 2  ;;  %s2100_s13 = scalar_lea.sflag [#allocation4], %s2099_s22 }
 0xcc4   : > { %p3641_p12 = scmp.ne.s32.totalorder %s3640_s10, 0 }
 0xcc6   : > { %p2763_p1 = pnand %p3642_p2, %p3641_p12 }
 0xcc8   : > { %3125 = dma.done.wait (!%p2763_p1), %s2100_s13, 256  }
 0xcc9   : > { %3127 = vsyncadd (!%p2763_p1), %s2100_s13, 4294967040  ;;  %p22_p4 = scmp.ge.s32.totalorder %s3327_s8, 4   ;;  %s3643_s24 = smov %s3134_s25 }
 0xcca   : > { %s3644_s25 = smov %s3138_s26  ;;  %s3645_s26 = smov %s3337_s19 }
 0xccb   : > { %s3646_s27 = smov %s3327_s8  ;;  %24 = sbr.rel (!%p22_p4) target bundleno = 7 (0x7), region = 127 }
 0xcd2   :  { %2105 = vsyncpa [#allocation3], 1 }
 0xcd3   :  { %2107 = vsyncpa [#allocation3 + $0x1], 1 }
 0xcd4   :  { %2108 = vsyncpa [#allocation6], 1 }
 0xcd5   :  { %2109 = vsyncpa [#allocation9], 1 }
 0xcd6   :  { %2110 = vsyncpa [#allocation4], 1 }
 0xcd7   :  { %2112 = vsyncpa [#allocation4 + $0x1], 1 }

</bundles_post_ra>
